<compile_context>
chip_gen: v5e
topology: v5e:2x2
jax: 0.10.0
libtpu: 0.0.40
codegen_flags: <defaults>
</compile_context>

<pallas_src>
import jax
import jax.numpy as jnp
import numpy as np
from jax.experimental import pallas as pl
from jax.experimental.pallas import tpu as pltpu


def lm_kernel(x_ref, wih_ref, whh_ref, bias_ref, wout_ref, bout_ref,
              h_out_ref, probs_ref, gi_scr):
    Bp, Hp = h_out_ref.shape          # padded batch (sublane mult. of 8), padded hidden (lane mult. of 128)
    TBp = x_ref.shape[0]
    T = TBp // Bp
    H3 = 3 * Hp

    # Stacked biases: [b_r | b_z | b_in | b_hn], each Hp wide (128-aligned slices).
    b_gi = bias_ref[:, :H3]           # (1, 3Hp) -- folded r/z biases + input-side n bias
    b_hn = bias_ref[:, H3:]           # (1, Hp)  -- hidden-side n bias (lives inside r * (...))

    # ---- Hoisted input projection: ONE (T*Bp, E) x (E, 3Hp) matmul covers every
    # timestep and every gate; only h @ W_hh stays on the serial chain.
    gi_scr[...] = (jnp.dot(x_ref[...], wih_ref[...],
                           preferred_element_type=jnp.float32) + b_gi)

    whh = whh_ref[...]                # (Hp, 3Hp), loaded into values once

    def step(t, h):
        s = pl.multiple_of(t * Bp, Bp)            # Bp is a multiple of 8 -> tile-aligned slice
        gi = gi_scr[pl.ds(s, Bp), :]              # (Bp, 3Hp)
        gh = jnp.dot(h, whh, preferred_element_type=jnp.float32)   # single fused MXU op per step
        i_r, i_z, i_n = gi[:, :Hp], gi[:, Hp:2 * Hp], gi[:, 2 * Hp:]
        h_r, h_z, h_n = gh[:, :Hp], gh[:, Hp:2 * Hp], gh[:, 2 * Hp:]
        r = jax.nn.sigmoid(i_r + h_r)
        z = jax.nn.sigmoid(i_z + h_z)
        n = jnp.tanh(i_n + r * (h_n + b_hn))
        return (1.0 - z) * n + z * h

    h = jax.lax.fori_loop(0, T, step, jnp.zeros((Bp, Hp), jnp.float32),
                          unroll=min(T, 8))

    h_out_ref[...] = h

    # ---- Output projection + softmax (exact normalization; written once).
    logits = (jnp.dot(h, wout_ref[...], preferred_element_type=jnp.float32)
              + bout_ref[...])
    m = jnp.max(logits, axis=-1, keepdims=True)
    e = jnp.exp(logits - m)
    probs_ref[...] = e / jnp.sum(e, axis=-1, keepdims=True)


def _round_up(x, m):
    return ((x + m - 1) // m) * m


def _pad_to(a, shape):
    return jnp.pad(a, [(0, s - d) for d, s in zip(a.shape, shape)])


def language_model_forward(embeddings, w_ih, w_hh, b_ih, b_hh, w_out, b_out):
    """embeddings: (T, B, E) f32, PyTorch GRU layouts for weights.
    Returns (final hidden (B, H), softmax probs (B, V))."""
    T, B, E = embeddings.shape
    H = w_hh.shape[1]
    V = w_out.shape[0]

    Hp = _round_up(H, 128)            # lane width
    Bp = _round_up(B, 8)              # sublane width
    Vp = _round_up(V, 128)

    # Gate-split [r, z, n], transpose, zero-pad to Hp, refuse at 128-aligned offsets.
    wih_f = jnp.concatenate(
        [_pad_to(w_ih[g * H:(g + 1) * H].T, (E, Hp)) for g in range(3)], axis=1)   # (E, 3Hp)
    whh_f = jnp.concatenate(
        [_pad_to(w_hh[g * H:(g + 1) * H].T, (Hp, Hp)) for g in range(3)], axis=1)  # (Hp, 3Hp)

    # Biases: fold b_ih+b_hh for r/z; keep input-side and hidden-side n biases apart.
    b_r = _pad_to(b_ih[0:H] + b_hh[0:H], (Hp,))
    b_z = _pad_to(b_ih[H:2 * H] + b_hh[H:2 * H], (Hp,))
    b_in = _pad_to(b_ih[2 * H:3 * H], (Hp,))
    b_hn = _pad_to(b_hh[2 * H:3 * H], (Hp,))
    bias_all = jnp.concatenate([b_r, b_z, b_in, b_hn]).reshape(1, 4 * Hp)

    # Output projection: zero-pad hidden rows; padded vocab columns get -1e30
    # bias so they vanish under softmax.
    wout_f = _pad_to(w_out.T, (Hp, Vp))                                  # (Hp, Vp)
    bout_f = jnp.full((Vp,), -1e30, jnp.float32).at[:V].set(b_out).reshape(1, Vp)

    # Time-major flatten with batch padded to Bp (padded rows are zeros, sliced off at the end).
    x_flat = jnp.pad(embeddings, ((0, 0), (0, Bp - B), (0, 0))).reshape(T * Bp, E)

    vmem = pl.BlockSpec(memory_space=pltpu.MemorySpace.VMEM)

    hidden_p, probs_p = pl.pallas_call(
        lm_kernel,
        out_shape=(
            jax.ShapeDtypeStruct((Bp, Hp), jnp.float32),
            jax.ShapeDtypeStruct((Bp, Vp), jnp.float32),
        ),
        in_specs=[vmem] * 6,
        out_specs=(vmem, vmem),
        scratch_shapes=[pltpu.VMEM((T * Bp, 3 * Hp), jnp.float32)],
    )(x_flat, wih_f, whh_f, bias_all, wout_f, bout_f)

    return hidden_p[:B, :H], probs_p[:B, :V]


def reference_forward(embeddings, w_ih, w_hh, b_ih, b_hh, w_out, b_out):
    T, B, E = embeddings.shape
    H = w_hh.shape[1]
    h = jnp.zeros((B, H), jnp.float32)
    for t in range(T):
        x = embeddings[t]
        gi = x @ w_ih.T + b_ih
        gh = h @ w_hh.T + b_hh
        i_r, i_z, i_n = gi[:, :H], gi[:, H:2 * H], gi[:, 2 * H:]
        h_r, h_z, h_n = gh[:, :H], gh[:, H:2 * H], gh[:, 2 * H:]
        r = jax.nn.sigmoid(i_r + h_r)
        z = jax.nn.sigmoid(i_z + h_z)
        n = jnp.tanh(i_n + r * h_n)
        h = (1.0 - z) * n + z * h
    logits = h @ w_out.T + b_out
    return h, jax.nn.softmax(logits, axis=1)


if __name__ == "__main__":
    # Small, deterministic synthetic configuration consistent with the module:
    # word2vec.out_dim = E, hidden_dim = H, word2vec.lang.n_words = V.
    B, T, E, H, V = 2, 8, 32, 32, 128

    key = jax.random.PRNGKey(0)
    keys = jax.random.split(key, 8)

    # Deterministic "word2vec" embedding table and token ids (plain-JAX glue).
    emb_table = jax.random.normal(keys[0], (V, E), jnp.float32) * 0.1
    token_ids = jax.random.randint(keys[1], (T, B), 0, V)
    embeddings = emb_table[token_ids]                    # (T, B, E)

    # GRU parameters (PyTorch nn.GRU layout: weight_ih_l0 (3H,E), weight_hh_l0 (3H,H)).
    scale = 1.0 / np.sqrt(H)
    w_ih = jax.random.uniform(keys[2], (3 * H, E), jnp.float32, -scale, scale)
    w_hh = jax.random.uniform(keys[3], (3 * H, H), jnp.float32, -scale, scale)
    b_ih = jax.random.uniform(keys[4], (3 * H,), jnp.float32, -scale, scale)
    b_hh = jax.random.uniform(keys[5], (3 * H,), jnp.float32, -scale, scale)

    # Output projection nn.Linear(H, V).
    w_out = jax.random.uniform(keys[6], (V, H), jnp.float32, -scale, scale)
    b_out = jax.random.uniform(keys[7], (V,), jnp.float32, -scale, scale)

    hidden, probs = language_model_forward(
        embeddings, w_ih, w_hh, b_ih, b_hh, w_out, b_out)
    hidden = jax.block_until_ready(hidden)
    probs = jax.block_until_ready(probs)

    h_ref, p_ref = reference_forward(
        embeddings, w_ih, w_hh, b_ih, b_hh, w_out, b_out)

    np.testing.assert_allclose(np.asarray(hidden), np.asarray(h_ref),
                               rtol=1e-5, atol=1e-5)
    np.testing.assert_allclose(np.asarray(probs), np.asarray(p_ref),
                               rtol=1e-4, atol=1e-5)
    assert np.allclose(np.asarray(probs).sum(axis=1), 1.0, atol=1e-3)

    # TODO(synk): tokenizer / index2word greedy-decoding string loop has no Pallas
    # equivalent (host-side Python); only the per-step tensor math is implemented.
    print("KERNEL_OK")
</pallas_src>

<mosaic_0001>
module attributes {stable_mosaic.version = 11 : i64} {
  func.func @lm_kernel(%arg0: memref<64x32xf32, #tpu.memory_space<vmem>>, %arg1: memref<32x384xf32, #tpu.memory_space<vmem>>, %arg2: memref<128x384xf32, #tpu.memory_space<vmem>>, %arg3: memref<1x512xf32, #tpu.memory_space<vmem>>, %arg4: memref<128x128xf32, #tpu.memory_space<vmem>>, %arg5: memref<1x128xf32, #tpu.memory_space<vmem>>, %arg6: memref<8x128xf32, #tpu.memory_space<vmem>>, %arg7: memref<8x128xf32, #tpu.memory_space<vmem>>, %arg8: memref<64x384xf32, #tpu.memory_space<vmem>>) attributes {dimension_semantics = [], scalar_prefetch = 0 : i64, scratch_operands = 1 : i64, tpu.core_type = #tpu.core_type<tc>} {
    %c0 = arith.constant 0 : index
    %c0_0 = arith.constant 0 : index
    %0 = vector.load %arg3[%c0, %c0_0] : memref<1x512xf32, #tpu.memory_space<vmem>>, vector<1x384xf32>
    %c0_1 = arith.constant 0 : index
    %c384 = arith.constant 384 : index
    %1 = vector.load %arg3[%c0_1, %c384] : memref<1x512xf32, #tpu.memory_space<vmem>>, vector<1x128xf32>
    %c0_2 = arith.constant 0 : index
    %c0_3 = arith.constant 0 : index
    %2 = vector.load %arg0[%c0_2, %c0_3] : memref<64x32xf32, #tpu.memory_space<vmem>>, vector<64x32xf32>
    %c0_4 = arith.constant 0 : index
    %c0_5 = arith.constant 0 : index
    %3 = vector.load %arg1[%c0_4, %c0_5] : memref<32x384xf32, #tpu.memory_space<vmem>>, vector<32x384xf32>
    %cst = arith.constant dense<0.000000e+00> : vector<64x384xf32>
    %4 = tpu.matmul %2, %3, %cst {dimension_numbers = #tpu.dot_dimension_numbers<[1], [0], [0], [1], [0, 0, 1, 1], [], []>} : vector<64x32xf32>, vector<32x384xf32>, vector<64x384xf32> -> vector<64x384xf32>
    %5 = vector.broadcast %0 : vector<1x384xf32> to vector<64x384xf32>
    %6 = arith.addf %4, %5 : vector<64x384xf32>
    %c0_6 = arith.constant 0 : index
    %c0_7 = arith.constant 0 : index
    %7 = vector.load %arg8[%c0_6, %c0_7] : memref<64x384xf32, #tpu.memory_space<vmem>>, vector<64x384xf32>
    tpu.vector_store %arg8[%c0_6, %c0_7], %6 {strides = array<i32>} : memref<64x384xf32, #tpu.memory_space<vmem>>, vector<64x384xf32>,
    %c0_8 = arith.constant 0 : index
    %c0_9 = arith.constant 0 : index
    %8 = vector.load %arg2[%c0_8, %c0_9] : memref<128x384xf32, #tpu.memory_space<vmem>>, vector<128x384xf32>
    %cst_10 = arith.constant 0.000000e+00 : f32
    %9 = vector.broadcast %cst_10 : f32 to vector<8x128xf32>
    %c0_i32 = arith.constant 0 : i32
    %c8_i32 = arith.constant 8 : i32
    %10 = arith.muli %c0_i32, %c8_i32 : i32
    %11 = tpu.assume_multiple %10, 8 : i32
    %12 = arith.index_cast %11 : i32 to index
    %c0_11 = arith.constant 0 : index
    %13 = vector.load %arg8[%12, %c0_11] : memref<64x384xf32, #tpu.memory_space<vmem>>, vector<8x384xf32>
    %cst_12 = arith.constant dense<0.000000e+00> : vector<8x384xf32>
    %14 = tpu.matmul %9, %8, %cst_12 {dimension_numbers = #tpu.dot_dimension_numbers<[1], [0], [0], [1], [0, 0, 1, 1], [], []>} : vector<8x128xf32>, vector<128x384xf32>, vector<8x384xf32> -> vector<8x384xf32>
    %15 = vector.extract_strided_slice %13 {offsets = [0, 0], sizes = [8, 128], strides = [1, 1]} : vector<8x384xf32> to vector<8x128xf32>
    %16 = vector.extract_strided_slice %13 {offsets = [0, 128], sizes = [8, 128], strides = [1, 1]} : vector<8x384xf32> to vector<8x128xf32>
    %17 = vector.extract_strided_slice %13 {offsets = [0, 256], sizes = [8, 128], strides = [1, 1]} : vector<8x384xf32> to vector<8x128xf32>
    %18 = vector.extract_strided_slice %14 {offsets = [0, 0], sizes = [8, 128], strides = [1, 1]} : vector<8x384xf32> to vector<8x128xf32>
    %19 = vector.extract_strided_slice %14 {offsets = [0, 128], sizes = [8, 128], strides = [1, 1]} : vector<8x384xf32> to vector<8x128xf32>
    %20 = vector.extract_strided_slice %14 {offsets = [0, 256], sizes = [8, 128], strides = [1, 1]} : vector<8x384xf32> to vector<8x128xf32>
    %21 = arith.addf %15, %18 : vector<8x128xf32>
    %22 = arith.negf %21 : vector<8x128xf32>
    %23 = math.exp %22 : vector<8x128xf32>
    %cst_13 = arith.constant 1.000000e+00 : f32
    %24 = vector.broadcast %cst_13 : f32 to vector<8x128xf32>
    %25 = arith.addf %24, %23 : vector<8x128xf32>
    %26 = arith.divf %24, %25 : vector<8x128xf32>
    %27 = arith.addf %16, %19 : vector<8x128xf32>
    %28 = arith.negf %27 : vector<8x128xf32>
    %29 = math.exp %28 : vector<8x128xf32>
    %cst_14 = arith.constant 1.000000e+00 : f32
    %30 = vector.broadcast %cst_14 : f32 to vector<8x128xf32>
    %31 = arith.addf %30, %29 : vector<8x128xf32>
    %32 = arith.divf %30, %31 : vector<8x128xf32>
    %33 = vector.broadcast %1 : vector<1x128xf32> to vector<8x128xf32>
    %34 = arith.addf %20, %33 : vector<8x128xf32>
    %35 = arith.mulf %26, %34 : vector<8x128xf32>
    %36 = arith.addf %17, %35 : vector<8x128xf32>
    %37 = math.tanh %36 : vector<8x128xf32>
    %cst_15 = arith.constant 1.000000e+00 : f32
    %38 = vector.broadcast %cst_15 : f32 to vector<8x128xf32>
    %39 = arith.subf %38, %32 : vector<8x128xf32>
    %40 = arith.mulf %39, %37 : vector<8x128xf32>
    %41 = arith.mulf %32, %9 : vector<8x128xf32>
    %42 = arith.addf %40, %41 : vector<8x128xf32>
    %c1_i32 = arith.constant 1 : i32
    %c8_i32_16 = arith.constant 8 : i32
    %43 = arith.muli %c1_i32, %c8_i32_16 : i32
    %44 = tpu.assume_multiple %43, 8 : i32
    %45 = arith.index_cast %44 : i32 to index
    %c0_17 = arith.constant 0 : index
    %46 = vector.load %arg8[%45, %c0_17] : memref<64x384xf32, #tpu.memory_space<vmem>>, vector<8x384xf32>
    %cst_18 = arith.constant dense<0.000000e+00> : vector<8x384xf32>
    %47 = tpu.matmul %42, %8, %cst_18 {dimension_numbers = #tpu.dot_dimension_numbers<[1], [0], [0], [1], [0, 0, 1, 1], [], []>} : vector<8x128xf32>, vector<128x384xf32>, vector<8x384xf32> -> vector<8x384xf32>
    %48 = vector.extract_strided_slice %46 {offsets = [0, 0], sizes = [8, 128], strides = [1, 1]} : vector<8x384xf32> to vector<8x128xf32>
    %49 = vector.extract_strided_slice %46 {offsets = [0, 128], sizes = [8, 128], strides = [1, 1]} : vector<8x384xf32> to vector<8x128xf32>
    %50 = vector.extract_strided_slice %46 {offsets = [0, 256], sizes = [8, 128], strides = [1, 1]} : vector<8x384xf32> to vector<8x128xf32>
    %51 = vector.extract_strided_slice %47 {offsets = [0, 0], sizes = [8, 128], strides = [1, 1]} : vector<8x384xf32> to vector<8x128xf32>
    %52 = vector.extract_strided_slice %47 {offsets = [0, 128], sizes = [8, 128], strides = [1, 1]} : vector<8x384xf32> to vector<8x128xf32>
    %53 = vector.extract_strided_slice %47 {offsets = [0, 256], sizes = [8, 128], strides = [1, 1]} : vector<8x384xf32> to vector<8x128xf32>
    %54 = arith.addf %48, %51 : vector<8x128xf32>
    %55 = arith.negf %54 : vector<8x128xf32>
    %56 = math.exp %55 : vector<8x128xf32>
    %cst_19 = arith.constant 1.000000e+00 : f32
    %57 = vector.broadcast %cst_19 : f32 to vector<8x128xf32>
    %58 = arith.addf %57, %56 : vector<8x128xf32>
    %59 = arith.divf %57, %58 : vector<8x128xf32>
    %60 = arith.addf %49, %52 : vector<8x128xf32>
    %61 = arith.negf %60 : vector<8x128xf32>
    %62 = math.exp %61 : vector<8x128xf32>
    %cst_20 = arith.constant 1.000000e+00 : f32
    %63 = vector.broadcast %cst_20 : f32 to vector<8x128xf32>
    %64 = arith.addf %63, %62 : vector<8x128xf32>
    %65 = arith.divf %63, %64 : vector<8x128xf32>
    %66 = vector.broadcast %1 : vector<1x128xf32> to vector<8x128xf32>
    %67 = arith.addf %53, %66 : vector<8x128xf32>
    %68 = arith.mulf %59, %67 : vector<8x128xf32>
    %69 = arith.addf %50, %68 : vector<8x128xf32>
    %70 = math.tanh %69 : vector<8x128xf32>
    %cst_21 = arith.constant 1.000000e+00 : f32
    %71 = vector.broadcast %cst_21 : f32 to vector<8x128xf32>
    %72 = arith.subf %71, %65 : vector<8x128xf32>
    %73 = arith.mulf %72, %70 : vector<8x128xf32>
    %74 = arith.mulf %65, %42 : vector<8x128xf32>
    %75 = arith.addf %73, %74 : vector<8x128xf32>
    %c2_i32 = arith.constant 2 : i32
    %c8_i32_22 = arith.constant 8 : i32
    %76 = arith.muli %c2_i32, %c8_i32_22 : i32
    %77 = tpu.assume_multiple %76, 8 : i32
    %78 = arith.index_cast %77 : i32 to index
    %c0_23 = arith.constant 0 : index
    %79 = vector.load %arg8[%78, %c0_23] : memref<64x384xf32, #tpu.memory_space<vmem>>, vector<8x384xf32>
    %cst_24 = arith.constant dense<0.000000e+00> : vector<8x384xf32>
    %80 = tpu.matmul %75, %8, %cst_24 {dimension_numbers = #tpu.dot_dimension_numbers<[1], [0], [0], [1], [0, 0, 1, 1], [], []>} : vector<8x128xf32>, vector<128x384xf32>, vector<8x384xf32> -> vector<8x384xf32>
    %81 = vector.extract_strided_slice %79 {offsets = [0, 0], sizes = [8, 128], strides = [1, 1]} : vector<8x384xf32> to vector<8x128xf32>
    %82 = vector.extract_strided_slice %79 {offsets = [0, 128], sizes = [8, 128], strides = [1, 1]} : vector<8x384xf32> to vector<8x128xf32>
    %83 = vector.extract_strided_slice %79 {offsets = [0, 256], sizes = [8, 128], strides = [1, 1]} : vector<8x384xf32> to vector<8x128xf32>
    %84 = vector.extract_strided_slice %80 {offsets = [0, 0], sizes = [8, 128], strides = [1, 1]} : vector<8x384xf32> to vector<8x128xf32>
    %85 = vector.extract_strided_slice %80 {offsets = [0, 128], sizes = [8, 128], strides = [1, 1]} : vector<8x384xf32> to vector<8x128xf32>
    %86 = vector.extract_strided_slice %80 {offsets = [0, 256], sizes = [8, 128], strides = [1, 1]} : vector<8x384xf32> to vector<8x128xf32>
    %87 = arith.addf %81, %84 : vector<8x128xf32>
    %88 = arith.negf %87 : vector<8x128xf32>
    %89 = math.exp %88 : vector<8x128xf32>
    %cst_25 = arith.constant 1.000000e+00 : f32
    %90 = vector.broadcast %cst_25 : f32 to vector<8x128xf32>
    %91 = arith.addf %90, %89 : vector<8x128xf32>
    %92 = arith.divf %90, %91 : vector<8x128xf32>
    %93 = arith.addf %82, %85 : vector<8x128xf32>
    %94 = arith.negf %93 : vector<8x128xf32>
    %95 = math.exp %94 : vector<8x128xf32>
    %cst_26 = arith.constant 1.000000e+00 : f32
    %96 = vector.broadcast %cst_26 : f32 to vector<8x128xf32>
    %97 = arith.addf %96, %95 : vector<8x128xf32>
    %98 = arith.divf %96, %97 : vector<8x128xf32>
    %99 = vector.broadcast %1 : vector<1x128xf32> to vector<8x128xf32>
    %100 = arith.addf %86, %99 : vector<8x128xf32>
    %101 = arith.mulf %92, %100 : vector<8x128xf32>
    %102 = arith.addf %83, %101 : vector<8x128xf32>
    %103 = math.tanh %102 : vector<8x128xf32>
    %cst_27 = arith.constant 1.000000e+00 : f32
    %104 = vector.broadcast %cst_27 : f32 to vector<8x128xf32>
    %105 = arith.subf %104, %98 : vector<8x128xf32>
    %106 = arith.mulf %105, %103 : vector<8x128xf32>
    %107 = arith.mulf %98, %75 : vector<8x128xf32>
    %108 = arith.addf %106, %107 : vector<8x128xf32>
    %c3_i32 = arith.constant 3 : i32
    %c8_i32_28 = arith.constant 8 : i32
    %109 = arith.muli %c3_i32, %c8_i32_28 : i32
    %110 = tpu.assume_multiple %109, 8 : i32
    %111 = arith.index_cast %110 : i32 to index
    %c0_29 = arith.constant 0 : index
    %112 = vector.load %arg8[%111, %c0_29] : memref<64x384xf32, #tpu.memory_space<vmem>>, vector<8x384xf32>
    %cst_30 = arith.constant dense<0.000000e+00> : vector<8x384xf32>
    %113 = tpu.matmul %108, %8, %cst_30 {dimension_numbers = #tpu.dot_dimension_numbers<[1], [0], [0], [1], [0, 0, 1, 1], [], []>} : vector<8x128xf32>, vector<128x384xf32>, vector<8x384xf32> -> vector<8x384xf32>
    %114 = vector.extract_strided_slice %112 {offsets = [0, 0], sizes = [8, 128], strides = [1, 1]} : vector<8x384xf32> to vector<8x128xf32>
    %115 = vector.extract_strided_slice %112 {offsets = [0, 128], sizes = [8, 128], strides = [1, 1]} : vector<8x384xf32> to vector<8x128xf32>
    %116 = vector.extract_strided_slice %112 {offsets = [0, 256], sizes = [8, 128], strides = [1, 1]} : vector<8x384xf32> to vector<8x128xf32>
    %117 = vector.extract_strided_slice %113 {offsets = [0, 0], sizes = [8, 128], strides = [1, 1]} : vector<8x384xf32> to vector<8x128xf32>
    %118 = vector.extract_strided_slice %113 {offsets = [0, 128], sizes = [8, 128], strides = [1, 1]} : vector<8x384xf32> to vector<8x128xf32>
    %119 = vector.extract_strided_slice %113 {offsets = [0, 256], sizes = [8, 128], strides = [1, 1]} : vector<8x384xf32> to vector<8x128xf32>
    %120 = arith.addf %114, %117 : vector<8x128xf32>
    %121 = arith.negf %120 : vector<8x128xf32>
    %122 = math.exp %121 : vector<8x128xf32>
    %cst_31 = arith.constant 1.000000e+00 : f32
    %123 = vector.broadcast %cst_31 : f32 to vector<8x128xf32>
    %124 = arith.addf %123, %122 : vector<8x128xf32>
    %125 = arith.divf %123, %124 : vector<8x128xf32>
    %126 = arith.addf %115, %118 : vector<8x128xf32>
    %127 = arith.negf %126 : vector<8x128xf32>
    %128 = math.exp %127 : vector<8x128xf32>
    %cst_32 = arith.constant 1.000000e+00 : f32
    %129 = vector.broadcast %cst_32 : f32 to vector<8x128xf32>
    %130 = arith.addf %129, %128 : vector<8x128xf32>
    %131 = arith.divf %129, %130 : vector<8x128xf32>
    %132 = vector.broadcast %1 : vector<1x128xf32> to vector<8x128xf32>
    %133 = arith.addf %119, %132 : vector<8x128xf32>
    %134 = arith.mulf %125, %133 : vector<8x128xf32>
    %135 = arith.addf %116, %134 : vector<8x128xf32>
    %136 = math.tanh %135 : vector<8x128xf32>
    %cst_33 = arith.constant 1.000000e+00 : f32
    %137 = vector.broadcast %cst_33 : f32 to vector<8x128xf32>
    %138 = arith.subf %137, %131 : vector<8x128xf32>
    %139 = arith.mulf %138, %136 : vector<8x128xf32>
    %140 = arith.mulf %131, %108 : vector<8x128xf32>
    %141 = arith.addf %139, %140 : vector<8x128xf32>
    %c4_i32 = arith.constant 4 : i32
    %c8_i32_34 = arith.constant 8 : i32
    %142 = arith.muli %c4_i32, %c8_i32_34 : i32
    %143 = tpu.assume_multiple %142, 8 : i32
    %144 = arith.index_cast %143 : i32 to index
    %c0_35 = arith.constant 0 : index
    %145 = vector.load %arg8[%144, %c0_35] : memref<64x384xf32, #tpu.memory_space<vmem>>, vector<8x384xf32>
    %cst_36 = arith.constant dense<0.000000e+00> : vector<8x384xf32>
    %146 = tpu.matmul %141, %8, %cst_36 {dimension_numbers = #tpu.dot_dimension_numbers<[1], [0], [0], [1], [0, 0, 1, 1], [], []>} : vector<8x128xf32>, vector<128x384xf32>, vector<8x384xf32> -> vector<8x384xf32>
    %147 = vector.extract_strided_slice %145 {offsets = [0, 0], sizes = [8, 128], strides = [1, 1]} : vector<8x384xf32> to vector<8x128xf32>
    %148 = vector.extract_strided_slice %145 {offsets = [0, 128], sizes = [8, 128], strides = [1, 1]} : vector<8x384xf32> to vector<8x128xf32>
    %149 = vector.extract_strided_slice %145 {offsets = [0, 256], sizes = [8, 128], strides = [1, 1]} : vector<8x384xf32> to vector<8x128xf32>
    %150 = vector.extract_strided_slice %146 {offsets = [0, 0], sizes = [8, 128], strides = [1, 1]} : vector<8x384xf32> to vector<8x128xf32>
    %151 = vector.extract_strided_slice %146 {offsets = [0, 128], sizes = [8, 128], strides = [1, 1]} : vector<8x384xf32> to vector<8x128xf32>
    %152 = vector.extract_strided_slice %146 {offsets = [0, 256], sizes = [8, 128], strides = [1, 1]} : vector<8x384xf32> to vector<8x128xf32>
    %153 = arith.addf %147, %150 : vector<8x128xf32>
    %154 = arith.negf %153 : vector<8x128xf32>
    %155 = math.exp %154 : vector<8x128xf32>
    %cst_37 = arith.constant 1.000000e+00 : f32
    %156 = vector.broadcast %cst_37 : f32 to vector<8x128xf32>
    %157 = arith.addf %156, %155 : vector<8x128xf32>
    %158 = arith.divf %156, %157 : vector<8x128xf32>
    %159 = arith.addf %148, %151 : vector<8x128xf32>
    %160 = arith.negf %159 : vector<8x128xf32>
    %161 = math.exp %160 : vector<8x128xf32>
    %cst_38 = arith.constant 1.000000e+00 : f32
    %162 = vector.broadcast %cst_38 : f32 to vector<8x128xf32>
    %163 = arith.addf %162, %161 : vector<8x128xf32>
    %164 = arith.divf %162, %163 : vector<8x128xf32>
    %165 = vector.broadcast %1 : vector<1x128xf32> to vector<8x128xf32>
    %166 = arith.addf %152, %165 : vector<8x128xf32>
    %167 = arith.mulf %158, %166 : vector<8x128xf32>
    %168 = arith.addf %149, %167 : vector<8x128xf32>
    %169 = math.tanh %168 : vector<8x128xf32>
    %cst_39 = arith.constant 1.000000e+00 : f32
    %170 = vector.broadcast %cst_39 : f32 to vector<8x128xf32>
    %171 = arith.subf %170, %164 : vector<8x128xf32>
    %172 = arith.mulf %171, %169 : vector<8x128xf32>
    %173 = arith.mulf %164, %141 : vector<8x128xf32>
    %174 = arith.addf %172, %173 : vector<8x128xf32>
    %c5_i32 = arith.constant 5 : i32
    %c8_i32_40 = arith.constant 8 : i32
    %175 = arith.muli %c5_i32, %c8_i32_40 : i32
    %176 = tpu.assume_multiple %175, 8 : i32
    %177 = arith.index_cast %176 : i32 to index
    %c0_41 = arith.constant 0 : index
    %178 = vector.load %arg8[%177, %c0_41] : memref<64x384xf32, #tpu.memory_space<vmem>>, vector<8x384xf32>
    %cst_42 = arith.constant dense<0.000000e+00> : vector<8x384xf32>
    %179 = tpu.matmul %174, %8, %cst_42 {dimension_numbers = #tpu.dot_dimension_numbers<[1], [0], [0], [1], [0, 0, 1, 1], [], []>} : vector<8x128xf32>, vector<128x384xf32>, vector<8x384xf32> -> vector<8x384xf32>
    %180 = vector.extract_strided_slice %178 {offsets = [0, 0], sizes = [8, 128], strides = [1, 1]} : vector<8x384xf32> to vector<8x128xf32>
    %181 = vector.extract_strided_slice %178 {offsets = [0, 128], sizes = [8, 128], strides = [1, 1]} : vector<8x384xf32> to vector<8x128xf32>
    %182 = vector.extract_strided_slice %178 {offsets = [0, 256], sizes = [8, 128], strides = [1, 1]} : vector<8x384xf32> to vector<8x128xf32>
    %183 = vector.extract_strided_slice %179 {offsets = [0, 0], sizes = [8, 128], strides = [1, 1]} : vector<8x384xf32> to vector<8x128xf32>
    %184 = vector.extract_strided_slice %179 {offsets = [0, 128], sizes = [8, 128], strides = [1, 1]} : vector<8x384xf32> to vector<8x128xf32>
    %185 = vector.extract_strided_slice %179 {offsets = [0, 256], sizes = [8, 128], strides = [1, 1]} : vector<8x384xf32> to vector<8x128xf32>
    %186 = arith.addf %180, %183 : vector<8x128xf32>
    %187 = arith.negf %186 : vector<8x128xf32>
    %188 = math.exp %187 : vector<8x128xf32>
    %cst_43 = arith.constant 1.000000e+00 : f32
    %189 = vector.broadcast %cst_43 : f32 to vector<8x128xf32>
    %190 = arith.addf %189, %188 : vector<8x128xf32>
    %191 = arith.divf %189, %190 : vector<8x128xf32>
    %192 = arith.addf %181, %184 : vector<8x128xf32>
    %193 = arith.negf %192 : vector<8x128xf32>
    %194 = math.exp %193 : vector<8x128xf32>
    %cst_44 = arith.constant 1.000000e+00 : f32
    %195 = vector.broadcast %cst_44 : f32 to vector<8x128xf32>
    %196 = arith.addf %195, %194 : vector<8x128xf32>
    %197 = arith.divf %195, %196 : vector<8x128xf32>
    %198 = vector.broadcast %1 : vector<1x128xf32> to vector<8x128xf32>
    %199 = arith.addf %185, %198 : vector<8x128xf32>
    %200 = arith.mulf %191, %199 : vector<8x128xf32>
    %201 = arith.addf %182, %200 : vector<8x128xf32>
    %202 = math.tanh %201 : vector<8x128xf32>
    %cst_45 = arith.constant 1.000000e+00 : f32
    %203 = vector.broadcast %cst_45 : f32 to vector<8x128xf32>
    %204 = arith.subf %203, %197 : vector<8x128xf32>
    %205 = arith.mulf %204, %202 : vector<8x128xf32>
    %206 = arith.mulf %197, %174 : vector<8x128xf32>
    %207 = arith.addf %205, %206 : vector<8x128xf32>
    %c6_i32 = arith.constant 6 : i32
    %c8_i32_46 = arith.constant 8 : i32
    %208 = arith.muli %c6_i32, %c8_i32_46 : i32
    %209 = tpu.assume_multiple %208, 8 : i32
    %210 = arith.index_cast %209 : i32 to index
    %c0_47 = arith.constant 0 : index
    %211 = vector.load %arg8[%210, %c0_47] : memref<64x384xf32, #tpu.memory_space<vmem>>, vector<8x384xf32>
    %cst_48 = arith.constant dense<0.000000e+00> : vector<8x384xf32>
    %212 = tpu.matmul %207, %8, %cst_48 {dimension_numbers = #tpu.dot_dimension_numbers<[1], [0], [0], [1], [0, 0, 1, 1], [], []>} : vector<8x128xf32>, vector<128x384xf32>, vector<8x384xf32> -> vector<8x384xf32>
    %213 = vector.extract_strided_slice %211 {offsets = [0, 0], sizes = [8, 128], strides = [1, 1]} : vector<8x384xf32> to vector<8x128xf32>
    %214 = vector.extract_strided_slice %211 {offsets = [0, 128], sizes = [8, 128], strides = [1, 1]} : vector<8x384xf32> to vector<8x128xf32>
    %215 = vector.extract_strided_slice %211 {offsets = [0, 256], sizes = [8, 128], strides = [1, 1]} : vector<8x384xf32> to vector<8x128xf32>
    %216 = vector.extract_strided_slice %212 {offsets = [0, 0], sizes = [8, 128], strides = [1, 1]} : vector<8x384xf32> to vector<8x128xf32>
    %217 = vector.extract_strided_slice %212 {offsets = [0, 128], sizes = [8, 128], strides = [1, 1]} : vector<8x384xf32> to vector<8x128xf32>
    %218 = vector.extract_strided_slice %212 {offsets = [0, 256], sizes = [8, 128], strides = [1, 1]} : vector<8x384xf32> to vector<8x128xf32>
    %219 = arith.addf %213, %216 : vector<8x128xf32>
    %220 = arith.negf %219 : vector<8x128xf32>
    %221 = math.exp %220 : vector<8x128xf32>
    %cst_49 = arith.constant 1.000000e+00 : f32
    %222 = vector.broadcast %cst_49 : f32 to vector<8x128xf32>
    %223 = arith.addf %222, %221 : vector<8x128xf32>
    %224 = arith.divf %222, %223 : vector<8x128xf32>
    %225 = arith.addf %214, %217 : vector<8x128xf32>
    %226 = arith.negf %225 : vector<8x128xf32>
    %227 = math.exp %226 : vector<8x128xf32>
    %cst_50 = arith.constant 1.000000e+00 : f32
    %228 = vector.broadcast %cst_50 : f32 to vector<8x128xf32>
    %229 = arith.addf %228, %227 : vector<8x128xf32>
    %230 = arith.divf %228, %229 : vector<8x128xf32>
    %231 = vector.broadcast %1 : vector<1x128xf32> to vector<8x128xf32>
    %232 = arith.addf %218, %231 : vector<8x128xf32>
    %233 = arith.mulf %224, %232 : vector<8x128xf32>
    %234 = arith.addf %215, %233 : vector<8x128xf32>
    %235 = math.tanh %234 : vector<8x128xf32>
    %cst_51 = arith.constant 1.000000e+00 : f32
    %236 = vector.broadcast %cst_51 : f32 to vector<8x128xf32>
    %237 = arith.subf %236, %230 : vector<8x128xf32>
    %238 = arith.mulf %237, %235 : vector<8x128xf32>
    %239 = arith.mulf %230, %207 : vector<8x128xf32>
    %240 = arith.addf %238, %239 : vector<8x128xf32>
    %c7_i32 = arith.constant 7 : i32
    %c8_i32_52 = arith.constant 8 : i32
    %241 = arith.muli %c7_i32, %c8_i32_52 : i32
    %242 = tpu.assume_multiple %241, 8 : i32
    %243 = arith.index_cast %242 : i32 to index
    %c0_53 = arith.constant 0 : index
    %244 = vector.load %arg8[%243, %c0_53] : memref<64x384xf32, #tpu.memory_space<vmem>>, vector<8x384xf32>
    %cst_54 = arith.constant dense<0.000000e+00> : vector<8x384xf32>
    %245 = tpu.matmul %240, %8, %cst_54 {dimension_numbers = #tpu.dot_dimension_numbers<[1], [0], [0], [1], [0, 0, 1, 1], [], []>} : vector<8x128xf32>, vector<128x384xf32>, vector<8x384xf32> -> vector<8x384xf32>
    %246 = vector.extract_strided_slice %244 {offsets = [0, 0], sizes = [8, 128], strides = [1, 1]} : vector<8x384xf32> to vector<8x128xf32>
    %247 = vector.extract_strided_slice %244 {offsets = [0, 128], sizes = [8, 128], strides = [1, 1]} : vector<8x384xf32> to vector<8x128xf32>
    %248 = vector.extract_strided_slice %244 {offsets = [0, 256], sizes = [8, 128], strides = [1, 1]} : vector<8x384xf32> to vector<8x128xf32>
    %249 = vector.extract_strided_slice %245 {offsets = [0, 0], sizes = [8, 128], strides = [1, 1]} : vector<8x384xf32> to vector<8x128xf32>
    %250 = vector.extract_strided_slice %245 {offsets = [0, 128], sizes = [8, 128], strides = [1, 1]} : vector<8x384xf32> to vector<8x128xf32>
    %251 = vector.extract_strided_slice %245 {offsets = [0, 256], sizes = [8, 128], strides = [1, 1]} : vector<8x384xf32> to vector<8x128xf32>
    %252 = arith.addf %246, %249 : vector<8x128xf32>
    %253 = arith.negf %252 : vector<8x128xf32>
    %254 = math.exp %253 : vector<8x128xf32>
    %cst_55 = arith.constant 1.000000e+00 : f32
    %255 = vector.broadcast %cst_55 : f32 to vector<8x128xf32>
    %256 = arith.addf %255, %254 : vector<8x128xf32>
    %257 = arith.divf %255, %256 : vector<8x128xf32>
    %258 = arith.addf %247, %250 : vector<8x128xf32>
    %259 = arith.negf %258 : vector<8x128xf32>
    %260 = math.exp %259 : vector<8x128xf32>
    %cst_56 = arith.constant 1.000000e+00 : f32
    %261 = vector.broadcast %cst_56 : f32 to vector<8x128xf32>
    %262 = arith.addf %261, %260 : vector<8x128xf32>
    %263 = arith.divf %261, %262 : vector<8x128xf32>
    %264 = vector.broadcast %1 : vector<1x128xf32> to vector<8x128xf32>
    %265 = arith.addf %251, %264 : vector<8x128xf32>
    %266 = arith.mulf %257, %265 : vector<8x128xf32>
    %267 = arith.addf %248, %266 : vector<8x128xf32>
    %268 = math.tanh %267 : vector<8x128xf32>
    %cst_57 = arith.constant 1.000000e+00 : f32
    %269 = vector.broadcast %cst_57 : f32 to vector<8x128xf32>
    %270 = arith.subf %269, %263 : vector<8x128xf32>
    %271 = arith.mulf %270, %268 : vector<8x128xf32>
    %272 = arith.mulf %263, %240 : vector<8x128xf32>
    %273 = arith.addf %271, %272 : vector<8x128xf32>
    %c8_i32_58 = arith.constant 8 : i32
    %c0_59 = arith.constant 0 : index
    %c0_60 = arith.constant 0 : index
    %274 = vector.load %arg6[%c0_59, %c0_60] : memref<8x128xf32, #tpu.memory_space<vmem>>, vector<8x128xf32>
    tpu.vector_store %arg6[%c0_59, %c0_60], %273 {strides = array<i32>} : memref<8x128xf32, #tpu.memory_space<vmem>>, vector<8x128xf32>,
    %c0_61 = arith.constant 0 : index
    %c0_62 = arith.constant 0 : index
    %275 = vector.load %arg4[%c0_61, %c0_62] : memref<128x128xf32, #tpu.memory_space<vmem>>, vector<128x128xf32>
    %cst_63 = arith.constant dense<0.000000e+00> : vector<8x128xf32>
    %276 = tpu.matmul %273, %275, %cst_63 {dimension_numbers = #tpu.dot_dimension_numbers<[1], [0], [0], [1], [0, 0, 1, 1], [], []>} : vector<8x128xf32>, vector<128x128xf32>, vector<8x128xf32> -> vector<8x128xf32>
    %c0_64 = arith.constant 0 : index
    %c0_65 = arith.constant 0 : index
    %277 = vector.load %arg5[%c0_64, %c0_65] : memref<1x128xf32, #tpu.memory_space<vmem>>, vector<1x128xf32>
    %278 = vector.broadcast %277 : vector<1x128xf32> to vector<8x128xf32>
    %279 = arith.addf %276, %278 : vector<8x128xf32>
    %cst_66 = arith.constant dense<0xFF800000> : vector<8xf32>
    %280 = vector.multi_reduction <maximumf>, %279, %cst_66 [1] : vector<8x128xf32> to vector<8xf32>
    %281 = vector.shape_cast %280 : vector<8xf32> to vector<8x1xf32>
    %282 = vector.broadcast %281 : vector<8x1xf32> to vector<8x128xf32>
    %283 = arith.subf %279, %282 : vector<8x128xf32>
    %284 = math.exp %283 : vector<8x128xf32>
    %cst_67 = arith.constant dense<0.000000e+00> : vector<8xf32>
    %285 = vector.multi_reduction <add>, %284, %cst_67 [1] : vector<8x128xf32> to vector<8xf32>
    %286 = vector.shape_cast %285 : vector<8xf32> to vector<8x1xf32>
    %287 = vector.broadcast %286 : vector<8x1xf32> to vector<8x128xf32>
    %288 = arith.divf %284, %287 : vector<8x128xf32>
    %c0_68 = arith.constant 0 : index
    %c0_69 = arith.constant 0 : index
    %289 = vector.load %arg7[%c0_68, %c0_69] : memref<8x128xf32, #tpu.memory_space<vmem>>, vector<8x128xf32>
    tpu.vector_store %arg7[%c0_68, %c0_69], %288 {strides = array<i32>} : memref<8x128xf32, #tpu.memory_space<vmem>>, vector<8x128xf32>,
    return
  }
}

</mosaic_0001>

<bundles_post_ra>
// kernel: tpu_custom_call.1
= control target key start
LH: loop header
LB: loop body
LE: loop exit
PB: predicated region body
PF: predicated region fallthrough
CT: control target
= control target key end

     0   :  { %13 = vsyncpa [#allocation4], 0  ;;  %s2508_s0 = inlined_call_operand.vmem [shape: f32[64,32], index: 0, kind: input, shape index: {}]   ;;  %s2509_s1 = inlined_call_operand.vmem [shape: f32[32,384], index: 1, kind: input, shape index: {}]   ;;  %s2510_s2 = inlined_call_operand.hbm [shape: f32[128,384], index: 2, kind: input, shape index: {}]   ;;  %s2511_s3 = inlined_call_operand.hbm [shape: f32[1,512], index: 3, kind: input, shape index: {}]   ;;  %s2512_s4 = inlined_call_operand.hbm [shape: f32[128,128], index: 4, kind: input, shape index: {}]   ;;  %s2513_s5 = inlined_call_operand.vmem [shape: f32[1,128], index: 5, kind: input, shape index: {}]   ;;  %s2514_s6 = inlined_call_operand.hbm [shape: f32[8,128], index: 6, kind: output, shape index: {0}]   ;;  %s2515_s7 = inlined_call_operand.hbm [shape: f32[8,128], index: 7, kind: output, shape index: {1}]  }
   0x1   :  { %14 = vsyncpa [#allocation7], 0 }
   0x2   :  { %15 = vsyncpa [#allocation5], 0  ;;  %s39_s26 = sshll.u32 %s2511_s3, 4  ;;  %s40_s26 = int_to_ptr.hbm [resolvable:$true] %s39_s26 }
   0x3   :  { %16 = vsyncpa [#allocation11], 0  ;;  %s1654_s27 = smov [#allocation6]   ;;  %s25_s8 = sshll.u32 %s2510_s2, 4  ;;  %s26_s8 = int_to_ptr.hbm [resolvable:$true] %s25_s8 }
   0x4   :  { %s41_s28 = sshll.u32 %s1654_s27, 4  ;;  %s1655_s9 = smov [#allocation3]   ;;  %s42_s28 = int_to_ptr.vmem [resolvable:$true] %s41_s28 }
   0x5   :  { %44 = dma.hbm_to_vmem [thread:$0]  %s40_s26, 64, %s42_s28, [#allocation7]  }
   0x6   :  { %s27_s10 = sshll.u32 %s1655_s9, 4  ;;  %s1656_s11 = smov 384   ;;  %s28_s10 = int_to_ptr.vmem [resolvable:$true] %s27_s10 }
   0x7   :  { %s1657_s12 = smov 24   ;;  %s49_s3 = sshll.u32 %s2512_s4, 4  ;;  %s50_s3 = int_to_ptr.hbm [resolvable:$true] %s49_s3 }
   0x8   :  { %33 = dma.hbm_to_vmem [thread:$0]  %s26_s8, 6144, %s28_s10, [#allocation4], %s1656_s11, %s1656_s11, %s1657_s12  }
   0x9   :  { %s1658_s15 = smov [#allocation8]   ;;  %s1659_s17 = smov 128  }
   0xa   :  { %s51_s16 = sshll.u32 %s1658_s15, 4  ;;  %s1660_s18 = smov 8   ;;  %s52_s16 = int_to_ptr.vmem [resolvable:$true] %s51_s16 }
   0xb   :  { %57 = dma.hbm_to_vmem [thread:$0]  %s50_s3, 2048, %s52_s16, [#allocation7], %s1659_s17, %s1659_s17, %s1660_s18  }
   0xc   :  { %1646 = dma.done.wait [#allocation4], 6144  }
   0xd   :  { %1647 = vsyncadd [#allocation4], 4294961152 }
   0xe   :  { %1648 = dma.done.wait [#allocation7], 2112  }
   0xf   :  { %1649 = vsyncadd [#allocation7], 4294965184  ;;  %v91_v0 = vld [vmem:[%s2509_s1 + $0x48] sm:$0xff]  ;;  %v88_v2 = vld [vmem:[%s2509_s1 + $0x30] sm:$0xff]  ;;  %vm101_vm0 = vcmask 261120   ;;  %v1661_v41 = vmov 0.0  }
  0x10   :  { %v1716_v1 = vld [vmem:[#allocation3 + $0x168] sm:$0xff]  ;;  %138 = vmatpush.msra.mxu0 %v91_v0  ;;  %v1722_v3 = vld [vmem:[#allocation3 + $0x150] sm:$0xff]  ;;  %v85_v4 = vld [vmem:[%s2509_s1 + $0x18] sm:$0xff]  ;;  %s1307_s10 = sshll.u32 %s2514_s6, 4  ;;  %s1662_s11 = smov [#allocation9]   ;;  %s1308_s10 = int_to_ptr.hbm [resolvable:$true] %s1307_s10 }
  0x11   :  { %327 = vmatpush.msra.mxu3 %v1716_v1  ;;  %v1727_v5 = vld [vmem:[#allocation3 + $0x138] sm:$0xff]  ;;  %v82_v6 = vld [vmem:[%s2509_s1] sm:$0xff]  ;;  %v1741_v9 = vld [vmem:[#allocation3 + $0x108] sm:$0xff]  ;;  %s1305_s12 = sshll.u32 %s1662_s11, 4  ;;  %s1318_s3 = sshll.u32 %s2515_s7, 4  ;;  %s1306_s12 = int_to_ptr.vmem [resolvable:$true] %s1305_s12  ;;  %s1319_s3 = int_to_ptr.hbm [resolvable:$true] %s1318_s3 }
  0x12   :  { %139 = vmatpush.msra.mxu0 %v88_v2  ;;  %v1733_v7 = vld [vmem:[#allocation3 + $0x120] sm:$0xff]  ;;  %v1743_v10 = vld [vmem:[#allocation3 + $0x178] sm:$0xff]  ;;  %v1748_v11 = vld [vmem:[#allocation3 + $0xf0] sm:$0xff] }
  0x13   :  { %328 = vmatpush.msra.mxu3 %v1722_v3  ;;  %v1739_v8 = vld [vmem:[%s2508_s0] sm:$0xff]  ;;  %v1754_v13 = vld [vmem:[#allocation3 + $0xd8] sm:$0xff]  ;;  %v1756_v14 = vld [vmem:[#allocation3 + $0x148] sm:$0xff] }
  0x14   :  { %140 = vmatpush.msra.mxu0 %v85_v4  ;;  %v1750_v12 = vld [vmem:[#allocation3 + $0x160] sm:$0xff]  ;;  %v1762_v16 = vld [vmem:[#allocation3 + $0x130] sm:$0xff]  ;;  %v1768_v17 = vld [vmem:[%s2508_s0 + $0x8] sm:$0xff] }
  0x15   :  { %329 = vmatpush.msra.mxu3 %v1727_v5  ;;  %v1759_v15 = vld [vmem:[#allocation3 + $0xc0] sm:$0xff]  ;;  %v1771_v18 = vld [vmem:[#allocation3 + $0xa8] sm:$0xff]  ;;  %v1773_v19 = vld [vmem:[#allocation3 + $0x118] sm:$0xff] }
  0x16   :  { %141 = vmatpush.msra.mxu0 %v82_v6  ;;  %v1779_v20 = vld [vmem:[#allocation3 + $0x90] sm:$0xff]  ;;  %v1781_v21 = vld [vmem:[#allocation3 + $0x100] sm:$0xff]  ;;  %v1785_v22 = vld [vmem:[#allocation3 + $0x78] sm:$0xff] }
  0x17   :  { %330 = vmatpush.msra.mxu3 %v1733_v7  ;;  %1341 = vmatmul.msk.f32.vlgmr.msra.gmra.mxu0 %vm101_vm0, %v1739_v8  ;;  %v1787_v23 = vld [vmem:[#allocation3 + $0xe8] sm:$0xff]  ;;  %v1791_v24 = vld [vmem:[#allocation3 + $0x60] sm:$0xff]  ;;  %v1797_v25 = vld [vmem:[%s2508_s0 + $0x10] sm:$0xff] }
  0x18   :  { %367 = vmatpush.msrb.mxu0 %v1743_v10  ;;  %v1800_v26 = vld [vmem:[#allocation3 + $0xd0] sm:$0xff]  ;;  %v1802_v27 = vld [vmem:[#allocation3 + $0x48] sm:$0xff]  ;;  %v1811_v29 = vld [vmem:[#allocation3 + $0xb8] sm:$0xff] }
  0x19   :  { %331 = vmatpush.msra.mxu3 %v1741_v9  ;;  %v1808_v28 = vld [vmem:[#allocation3 + $0x30] sm:$0xff]  ;;  %v1813_v30 = vld [vmem:[#allocation3 + $0x18] sm:$0xff]  ;;  %v1817_v31 = vld [vmem:[#allocation3 + $0xa0] sm:$0xff] }
  0x1a   :  { %368 = vmatpush.msrb.mxu0 %v1750_v12  ;;  %2536 = vst [vmem:[#allocation16_spill] sm:$0xff] %v1808_v28  ;;  %v92_v32 = vld [vmem:[%s2509_s1 + $0x50] sm:$0xff]  ;;  %v1822_v33 = vld [vmem:[#allocation3] sm:$0xff]  ;;  %v1827_v34 = vld [vmem:[%s2508_s0 + $0x18] sm:$0xff] }
  0x1b   :  { %332 = vmatpush.msra.mxu3 %v1748_v11  ;;  %2537 = vst [vmem:[#allocation17_spill] sm:$0xff] %v1813_v30  ;;  %179 = vmatpush.msra.mxu1 %v92_v32  ;;  %v93_v35 = vld [vmem:[%s2509_s1 + $0x58] sm:$0xff]  ;;  %v1834_v36 = vld [vmem:[#allocation3 + $0x88] sm:$0xff]  ;;  %v1839_v38 = vld [vmem:[#allocation3 + $0x170] sm:$0xff] }
  0x1c   :  { %369 = vmatpush.msrb.mxu0 %v1756_v14  ;;  %2538 = vst [vmem:[#allocation18_spill] sm:$0xff] %v1822_v33  ;;  %v89_v37 = vld [vmem:[%s2509_s1 + $0x38] sm:$0xff]  ;;  %220 = vmatpush.msra.mxu2 %v93_v35  ;;  %v90_v39 = vld [vmem:[%s2509_s1 + $0x40] sm:$0xff]  ;;  %v1846_v40 = vld [vmem:[#allocation3 + $0x70] sm:$0xff] }
  0x1d   :  { %333 = vmatpush.msra.mxu3 %v1754_v13  ;;  %180 = vmatpush.msra.mxu1 %v89_v37  ;;  %v1851_v42 = vld [vmem:[#allocation3 + $0x158] sm:$0xff]  ;;  %v86_v43 = vld [vmem:[%s2509_s1 + $0x20] sm:$0xff]  ;;  %v87_v44 = vld [vmem:[%s2509_s1 + $0x28] sm:$0xff] }
  0x1e   :  { %370 = vmatpush.msrb.mxu0 %v1762_v16  ;;  %221 = vmatpush.msra.mxu2 %v90_v39  ;;  %v1860_v45 = vld [vmem:[#allocation3 + $0x58] sm:$0xff]  ;;  %v83_v46 = vld [vmem:[%s2509_s1 + $0x8] sm:$0xff]  ;;  %v1865_v47 = vld [vmem:[#allocation3 + $0x140] sm:$0xff] }
  0x1f   :  { %334 = vmatpush.msra.mxu3 %v1759_v15  ;;  %1342 = vmatmul.msk.f32.gmra.mxu0 %vm101_vm0, %v1768_v17  ;;  %v84_v48 = vld [vmem:[%s2509_s1 + $0x10] sm:$0xff]  ;;  %v1872_v49 = vld [vmem:[#allocation3 + $0x40] sm:$0xff]  ;;  %v1874_v50 = vld [vmem:[#allocation3 + $0x128] sm:$0xff] }
  0x20   :  { %371 = vmatpush.msrb.mxu0 %v1773_v19  ;;  %181 = vmatpush.msra.mxu1 %v86_v43  ;;  %2539 = vst [vmem:[#allocation19_spill] sm:$0xff] %v1872_v49  ;;  %v1881_v51 = vld [vmem:[%s2508_s0 + $0x20] sm:$0xff]  ;;  %v1885_v52 = vld [vmem:[#allocation3 + $0x110] sm:$0xff]  ;;  %v1888_v53 = vld [vmem:[#allocation3 + $0x28] sm:$0xff] }
  0x21   :  { %335 = vmatpush.msra.mxu3 %v1771_v18  ;;  %222 = vmatpush.msra.mxu2 %v87_v44  ;;  %2540 = vst [vmem:[#allocation20_spill] sm:$0xff] %v1888_v53  ;;  %v1895_v54 = vld [vmem:[#allocation3 + $0xf8] sm:$0xff]  ;;  %v1897_v55 = vld [vmem:[#allocation3 + $0x10] sm:$0xff]  ;;  %v1902_v56 = vld [vmem:[#allocation3 + $0xe0] sm:$0xff] }
  0x22   :  { %372 = vmatpush.msrb.mxu0 %v1781_v21  ;;  %182 = vmatpush.msra.mxu1 %v83_v46  ;;  %2541 = vst [vmem:[#allocation21_spill] sm:$0xff] %v1897_v55  ;;  %v1908_v57 = vld [vmem:[#allocation3 + $0xc8] sm:$0xff]  ;;  %v1920_v59 = vld [vmem:[#allocation3 + $0xb0] sm:$0xff]  ;;  %v1929_v60 = vld [vmem:[#allocation3 + $0x98] sm:$0xff] }
  0x23   :  { %336 = vmatpush.msra.mxu3 %v1779_v20  ;;  %1349 = vmatmul.msk.f32.vlgmr.msra.gmra.mxu1 %vm101_vm0, %v1739_v8  ;;  %v1916_v58 = vld [vmem:[%s2508_s0 + $0x28] sm:$0xff]  ;;  %v1934_v61 = vld [vmem:[#allocation3 + $0x80] sm:$0xff]  ;;  %v1948_v63 = vld [vmem:[%s2508_s0 + $0x30] sm:$0xff] }
  0x24   :  { %373 = vmatpush.msrb.mxu0 %v1787_v23  ;;  %223 = vmatpush.msra.mxu2 %v84_v48  ;;  %v1940_v62 = vld [vmem:[#allocation3 + $0x68] sm:$0xff]  ;;  %v1952_v0 = vld [vmem:[#allocation3 + $0x50] sm:$0xff]  ;;  %v1961_v2 = vld [vmem:[#allocation3 + $0x38] sm:$0xff] }
  0x25   :  { %337 = vmatpush.msra.mxu3 %v1785_v22  ;;  %1357 = vmatmul.msk.f32.vlgmr.msra.gmra.mxu2 %vm101_vm0, %v1739_v8  ;;  %2542 = vst [vmem:[#allocation22_spill] sm:$0xff] %v1952_v0  ;;  %v1966_v4 = vld [vmem:[#allocation3 + $0x20] sm:$0xff]  ;;  %v1972_v6 = vld [vmem:[#allocation3 + $0x8] sm:$0xff]  ;;  %v1980_v8 = vld [vmem:[%s2508_s0 + $0x38] sm:$0xff] }
  0x26   :  { %374 = vmatpush.msrb.mxu0 %v1800_v26  ;;  %444 = vmatpush.msrb.mxu1 %v1716_v1  ;;  %2543 = vst [vmem:[#allocation23_spill] sm:$0xff] %v1961_v2 }
  0x27   :  { %338 = vmatpush.msra.mxu3 %v1791_v24  ;;  %1343 = vmatmul.msk.f32.gmra.mxu0 %vm101_vm0, %v1797_v25  ;;  %2544 = vst [vmem:[#allocation24_spill] sm:$0xff] %v1966_v4 }
  0x28   :  { %375 = vmatpush.msrb.mxu0 %v1811_v29  ;;  %464 = vmatpush.msrb.mxu2 %v1839_v38  ;;  %2545 = vst [vmem:[#allocation25_spill] sm:$0xff] %v1972_v6 }
  0x29   :  { %339 = vmatpush.msra.mxu3 %v1802_v27  ;;  %445 = vmatpush.msrb.mxu1 %v1722_v3 }
  0x2a   :  { %376 = vmatpush.msrb.mxu0 %v1817_v31  ;;  %465 = vmatpush.msrb.mxu2 %v1851_v42 }
  0x2b   :  { %340 = vmatpush.msra.mxu3 %v1808_v28  ;;  %446 = vmatpush.msrb.mxu1 %v1727_v5 }
  0x2c   :  { %377 = vmatpush.msrb.mxu0 %v1834_v36  ;;  %1350 = vmatmul.msk.f32.gmra.mxu1 %vm101_vm0, %v1768_v17 }
  0x2d   :  { %341 = vmatpush.msra.mxu3 %v1813_v30  ;;  %466 = vmatpush.msrb.mxu2 %v1865_v47 }
  0x2e   :  { %378 = vmatpush.msrb.mxu0 %v1846_v40  ;;  %447 = vmatpush.msrb.mxu1 %v1733_v7 }
  0x2f   :  { %342 = vmatpush.msra.mxu3 %v1822_v33  ;;  %1344 = vmatmul.msk.f32.gmra.mxu0 %vm101_vm0, %v1827_v34 }
  0x30   :  { %343 = vmatmul.f32.vlgmr.msra.gmra.mxu3 %v1661_v41  ;;  %379 = vmatpush.msrb.mxu0 %v1860_v45 }
  0x31   :  { %347 = vmatpush.msrb.mxu3 %v1839_v38  ;;  %1358 = vmatmul.msk.f32.gmra.mxu2 %vm101_vm0, %v1768_v17 }
  0x32   :  { %380 = vmatpush.msrb.mxu0 %v1872_v49  ;;  %467 = vmatpush.msrb.mxu2 %v1874_v50 }
  0x33   :  { %348 = vmatpush.msrb.mxu3 %v1851_v42  ;;  %448 = vmatpush.msrb.mxu1 %v1741_v9 }
  0x34   :  { %381 = vmatpush.msrb.mxu0 %v1888_v53  ;;  %468 = vmatpush.msrb.mxu2 %v1885_v52 }
  0x35   :  { %349 = vmatpush.msrb.mxu3 %v1865_v47  ;;  %449 = vmatpush.msrb.mxu1 %v1748_v11 }
  0x36   :  { %382 = vmatpush.msrb.mxu0 %v1897_v55  ;;  %469 = vmatpush.msrb.mxu2 %v1895_v54 }
  0x37   :  { %350 = vmatpush.msrb.mxu3 %v1874_v50  ;;  %1345 = vmatmul.msk.f32.gmra.mxu0 %vm101_vm0, %v1881_v51 }
  0x38   :  { %558 = vmatpush.msra.mxu0 %v1716_v1  ;;  %1351 = vmatmul.msk.f32.gmra.mxu1 %vm101_vm0, %v1797_v25 }
  0x39   :  { %351 = vmatpush.msrb.mxu3 %v1885_v52  ;;  %450 = vmatpush.msrb.mxu1 %v1754_v13 }
  0x3a   :  { %559 = vmatpush.msra.mxu0 %v1722_v3  ;;  %470 = vmatpush.msrb.mxu2 %v1902_v56 }
  0x3b   :  { %352 = vmatpush.msrb.mxu3 %v1895_v54  ;;  %1359 = vmatmul.msk.f32.gmra.mxu2 %vm101_vm0, %v1797_v25  ;;  %v72_v25 = vld [vmem:[#allocation6] sm:$0x7] }
  0x3c   :  { %451 = vmatpush.msrb.mxu1 %v1759_v15  ;;  %471 = vmatpush.msrb.mxu2 %v1908_v57  ;;  %v95_v32 = vperm.slane %v72_v25, 0 }
  0x3d   :  { %353 = vmatpush.msrb.mxu3 %v1902_v56  ;;  %560 = vmatpush.msra.mxu0 %v1727_v5 }
  0x3e   :  { %452 = vmatpush.msrb.mxu1 %v1771_v18  ;;  %472 = vmatpush.msrb.mxu2 %v1920_v59 }
  0x3f   :  { %354 = vmatpush.msrb.mxu3 %v1908_v57  ;;  %1346 = vmatmul.msk.f32.gmra.mxu0 %vm101_vm0, %v1916_v58 }
  0x40   :  { %453 = vmatpush.msrb.mxu1 %v1779_v20  ;;  %561 = vmatpush.msra.mxu0 %v1733_v7 }
  0x41   :  { %355 = vmatpush.msrb.mxu3 %v1920_v59  ;;  %1352 = vmatmul.msk.f32.gmra.mxu1 %vm101_vm0, %v1827_v34 }
  0x42   :  { %473 = vmatpush.msrb.mxu2 %v1929_v60  ;;  %454 = vmatpush.msrb.mxu1 %v1785_v22 }
  0x43   :  { %356 = vmatpush.msrb.mxu3 %v1929_v60  ;;  %1360 = vmatmul.msk.f32.gmra.mxu2 %vm101_vm0, %v1827_v34 }
  0x44   :  { %474 = vmatpush.msrb.mxu2 %v1934_v61  ;;  %455 = vmatpush.msrb.mxu1 %v1791_v24 }
  0x45   :  { %357 = vmatpush.msrb.mxu3 %v1934_v61  ;;  %562 = vmatpush.msra.mxu0 %v1741_v9 }
  0x46   :  { %475 = vmatpush.msrb.mxu2 %v1940_v62  ;;  %456 = vmatpush.msrb.mxu1 %v1802_v27 }
  0x47   :  { %358 = vmatpush.msrb.mxu3 %v1940_v62  ;;  %1347 = vmatmul.msk.f32.gmra.mxu0 %vm101_vm0, %v1948_v63 }
  0x48   :  { %563 = vmatpush.msra.mxu0 %v1748_v11  ;;  %476 = vmatpush.msrb.mxu2 %v1952_v0 }
  0x49   :  { %359 = vmatpush.msrb.mxu3 %v1952_v0  ;;  %1353 = vmatmul.msk.f32.gmra.mxu1 %vm101_vm0, %v1881_v51 }
  0x4a   :  { %457 = vmatpush.msrb.mxu1 %v1808_v28  ;;  %477 = vmatpush.msrb.mxu2 %v1961_v2 }
  0x4b   :  { %360 = vmatpush.msrb.mxu3 %v1961_v2  ;;  %1361 = vmatmul.msk.f32.gmra.mxu2 %vm101_vm0, %v1881_v51 }
  0x4c   :  { %458 = vmatpush.msrb.mxu1 %v1813_v30  ;;  %478 = vmatpush.msrb.mxu2 %v1966_v4 }
  0x4d   :  { %361 = vmatpush.msrb.mxu3 %v1966_v4  ;;  %564 = vmatpush.msra.mxu0 %v1754_v13 }
  0x4e   :  { %459 = vmatpush.msrb.mxu1 %v1822_v33  ;;  %479 = vmatpush.msrb.mxu2 %v1972_v6 }
  0x4f   :  { %362 = vmatpush.msrb.mxu3 %v1972_v6  ;;  %1348 = vmatmul.msk.f32.gmra.mxu0 %vm101_vm0, %v1980_v8 }
  0x50   :  { %363 = vmatmul.f32.vlgmr.msrb.gmra.mxu3 %v1661_v41  ;;  %578 = vmatpush.msra.mxu1 %v1839_v38 }
  0x51   :  { %484 = vmatpush.msra.mxu3 %v1743_v10  ;;  %1354 = vmatmul.msk.f32.gmra.mxu1 %vm101_vm0, %v1916_v58 }
  0x52   :  { %598 = vmatpush.msra.mxu2 %v1743_v10  ;;  %579 = vmatpush.msra.mxu1 %v1851_v42 }
  0x53   :  { %485 = vmatpush.msra.mxu3 %v1750_v12  ;;  %1362 = vmatmul.msk.f32.gmra.mxu2 %vm101_vm0, %v1916_v58 }
  0x54   :  { %599 = vmatpush.msra.mxu2 %v1750_v12  ;;  %580 = vmatpush.msra.mxu1 %v1865_v47 }
  0x55   :  { %486 = vmatpush.msra.mxu3 %v1756_v14  ;;  %565 = vmatpush.msra.mxu0 %v1759_v15 }
  0x56   :  { %600 = vmatpush.msra.mxu2 %v1756_v14  ;;  %581 = vmatpush.msra.mxu1 %v1874_v50 }
  0x57   :  { %487 = vmatpush.msra.mxu3 %v1762_v16  ;;  %383 = vmatmul.f32.vlgmr.msrb.gmra.mxu0 %v1661_v41 }
  0x58   :  { %566 = vmatpush.msra.mxu0 %v1771_v18  ;;  %601 = vmatpush.msra.mxu2 %v1762_v16 }
  0x59   :  { %488 = vmatpush.msra.mxu3 %v1773_v19  ;;  %582 = vmatpush.msra.mxu1 %v1885_v52 }
  0x5a   :  { %1355 = vmatmul.msk.f32.gmra.mxu1 %vm101_vm0, %v1948_v63  ;;  %602 = vmatpush.msra.mxu2 %v1773_v19 }
  0x5b   :  { %489 = vmatpush.msra.mxu3 %v1781_v21  ;;  %583 = vmatpush.msra.mxu1 %v1895_v54 }
  0x5c   :  { %1363 = vmatmul.msk.f32.gmra.mxu2 %vm101_vm0, %v1948_v63  ;;  %567 = vmatpush.msra.mxu0 %v1779_v20 }
  0x5d   :  { %490 = vmatpush.msra.mxu3 %v1787_v23  ;;  %603 = vmatpush.msra.mxu2 %v1781_v21 }
  0x5e   :  { %584 = vmatpush.msra.mxu1 %v1902_v56  ;;  %568 = vmatpush.msra.mxu0 %v1785_v22 }
  0x5f   :  { %491 = vmatpush.msra.mxu3 %v1800_v26  ;;  %604 = vmatpush.msra.mxu2 %v1787_v23 }
  0x60   :  { %585 = vmatpush.msra.mxu1 %v1908_v57  ;;  %569 = vmatpush.msra.mxu0 %v1791_v24 }
  0x61   :  { %492 = vmatpush.msra.mxu3 %v1811_v29  ;;  %605 = vmatpush.msra.mxu2 %v1800_v26 }
  0x62   :  { %586 = vmatpush.msra.mxu1 %v1920_v59  ;;  %570 = vmatpush.msra.mxu0 %v1802_v27 }
  0x63   :  { %493 = vmatpush.msra.mxu3 %v1817_v31  ;;  %1356 = vmatmul.msk.f32.gmra.mxu1 %vm101_vm0, %v1980_v8 }
  0x64   :  { %606 = vmatpush.msra.mxu2 %v1811_v29  ;;  %587 = vmatpush.msra.mxu1 %v1929_v60 }
  0x65   :  { %494 = vmatpush.msra.mxu3 %v1834_v36  ;;  %1364 = vmatmul.msk.f32.gmra.mxu2 %vm101_vm0, %v1980_v8 }
  0x66   :  { %607 = vmatpush.msra.mxu2 %v1817_v31  ;;  %588 = vmatpush.msra.mxu1 %v1934_v61 }
  0x67   :  { %495 = vmatpush.msra.mxu3 %v1846_v40  ;;  %571 = vmatpush.msra.mxu0 %v1808_v28 }
  0x68   :  { %608 = vmatpush.msra.mxu2 %v1834_v36  ;;  %589 = vmatpush.msra.mxu1 %v1940_v62 }
  0x69   :  { %496 = vmatpush.msra.mxu3 %v1860_v45  ;;  %572 = vmatpush.msra.mxu0 %v1813_v30 }
  0x6a   :  { %609 = vmatpush.msra.mxu2 %v1846_v40  ;;  %590 = vmatpush.msra.mxu1 %v1952_v0 }
  0x6b   :  { %497 = vmatpush.msra.mxu3 %v1872_v49  ;;  %573 = vmatpush.msra.mxu0 %v1822_v33 }
  0x6c   :  { %610 = vmatpush.msra.mxu2 %v1860_v45  ;;  %591 = vmatpush.msra.mxu1 %v1961_v2 }
  0x6d   :  { %498 = vmatpush.msra.mxu3 %v1888_v53  ;;  %692 = vmatpush.msrb.mxu0 %v1839_v38 }
  0x6e   :  { %611 = vmatpush.msra.mxu2 %v1872_v49  ;;  %592 = vmatpush.msra.mxu1 %v1966_v4 }
  0x6f   :  { %499 = vmatpush.msra.mxu3 %v1897_v55  ;;  %693 = vmatpush.msrb.mxu0 %v1851_v42 }
  0x70   :  { %612 = vmatpush.msra.mxu2 %v1888_v53  ;;  %593 = vmatpush.msra.mxu1 %v1972_v6 }
  0x71   :  { %672 = vmatpush.msrb.mxu3 %v1716_v1  ;;  %694 = vmatpush.msrb.mxu0 %v1865_v47 }
  0x72   :  { %613 = vmatpush.msra.mxu2 %v1897_v55 }
  0x73   :  { %673 = vmatpush.msrb.mxu3 %v1722_v3  ;;  %695 = vmatpush.msrb.mxu0 %v1874_v50 }
  0x75   :  { %674 = vmatpush.msrb.mxu3 %v1727_v5  ;;  %696 = vmatpush.msrb.mxu0 %v1885_v52 }
  0x77   :  { %675 = vmatpush.msrb.mxu3 %v1733_v7  ;;  %697 = vmatpush.msrb.mxu0 %v1895_v54 }
  0x79   :  { %676 = vmatpush.msrb.mxu3 %v1741_v9  ;;  %698 = vmatpush.msrb.mxu0 %v1902_v56 }
  0x7b   :  { %677 = vmatpush.msrb.mxu3 %v1748_v11  ;;  %699 = vmatpush.msrb.mxu0 %v1908_v57 }
  0x7d   :  { %678 = vmatpush.msrb.mxu3 %v1754_v13  ;;  %700 = vmatpush.msrb.mxu0 %v1920_v59 }
  0x7f   :  { %679 = vmatpush.msrb.mxu3 %v1759_v15  ;;  %701 = vmatpush.msrb.mxu0 %v1929_v60 }
  0x81   :  { %680 = vmatpush.msrb.mxu3 %v1771_v18  ;;  %702 = vmatpush.msrb.mxu0 %v1934_v61 }
  0x83   :  { %681 = vmatpush.msrb.mxu3 %v1779_v20  ;;  %703 = vmatpush.msrb.mxu0 %v1940_v62 }
  0x85   :  { %682 = vmatpush.msrb.mxu3 %v1785_v22  ;;  %704 = vmatpush.msrb.mxu0 %v1952_v0 }
  0x87   :  { %683 = vmatpush.msrb.mxu3 %v1791_v24  ;;  %705 = vmatpush.msrb.mxu0 %v1961_v2 }
  0x89   :  { %684 = vmatpush.msrb.mxu3 %v1802_v27  ;;  %706 = vmatpush.msrb.mxu0 %v1966_v4 }
  0x8b   :  { %685 = vmatpush.msrb.mxu3 %v1808_v28  ;;  %707 = vmatpush.msrb.mxu0 %v1972_v6 }
  0x8d   :  { %686 = vmatpush.msrb.mxu3 %v1813_v30 }
  0x8f   :  { %687 = vmatpush.msrb.mxu3 %v1822_v33 }
  0x94   :  { %v143_v17 = vpop.f32.mrf.mxu0 }
  0x95   :  { %v144_v44 = vadd.f32 %v143_v17, %v95_v32 }
  0x9c   :  { %v146_v34 = vpop.f32.mrf.mxu0 }
  0x9d   :  { %v2112_v35 = vadd.f32 %v146_v34, %v95_v32 }
  0x9f   :  { %2546 = vst [vmem:[#allocation26_spill] sm:$0xff] %v2112_v35 }
  0xa0   :  { %v184_v17 = vpop.f32.mrf.mxu1 }
  0xa4   :  { %v149_v37 = vpop.f32.mrf.mxu0 }
  0xa5   :  { %v2114_v39 = vadd.f32 %v149_v37, %v95_v32  ;;  %v2124_v37 = vperm.slane %v72_v25, 1 }
  0xa7   :  { %2547 = vst [vmem:[#allocation27_spill] sm:$0xff] %v2114_v39 }
  0xa8   :  { %2552 = vst [vmem:[#allocation32_spill] sm:$0xff] %v2124_v37 }
  0xac   :  { %v152_v41 = vpop.f32.mrf.mxu0 }
  0xad   :  { %v2116_v43 = vadd.f32 %v152_v41, %v95_v32 }
  0xaf   :  { %2548 = vst [vmem:[#allocation28_spill] sm:$0xff] %v2116_v43 }
  0xb3   :  { %v344_v46 = vpop.f32.mrf.mxu3 }
  0xb4   :  { %v387_v48 = vadd.f32 %v344_v46, %v144_v44  ;;  %v155_v51 = vpop.f32.mrf.mxu0  ;;  %v185_v46 = vadd.f32 %v184_v17, %v2124_v37 }
  0xb5   :  { %v2118_v58 = vadd.f32 %v155_v51, %v95_v32 }
  0xb6   :  { %v1365_v63 = vmul.f32 -1.442695, %v387_v48 }
  0xb7   :  { %2549 = vst [vmem:[#allocation29_spill] sm:$0xff] %v2118_v58 }
  0xb8   :  { %1393 = vpow2.f32 %v1365_v63 }
  0xbc   :  { %v158_v8 = vpop.f32.mrf.mxu0 }
  0xbd   :  { %v2120_v6 = vadd.f32 %v158_v8, %v95_v32 }
  0xbe   :  { %v1394_v33 = vpop.eup %1393 }
  0xbf   :  { %2550 = vst [vmem:[#allocation30_spill] sm:$0xff] %v2120_v6  ;;  %v391_v34 = vadd.f32 1.0, %v1394_v33 }
  0xc1   :  { %1395 = vrcp.f32 %v391_v34  ;;  %v403_v4 = vand.u32 2147483648, %v391_v34  ;;  %vm397_vm2 = vweird.f32 %v391_v34 }
  0xc4   :  { %v161_v35 = vpop.f32.mrf.mxu0 }
  0xc5   :  { %v2122_v55 = vadd.f32 %v161_v35, %v95_v32  ;;  %v2129_v35 = vld [vmem:[#allocation6 + $0x3] ss:$0 sm:$0xff] }
  0xc7   :  { %2551 = vst [vmem:[#allocation31_spill] sm:$0xff] %v2122_v55  ;;  %v1396_v43 = vpop.eup %1395 }
  0xc8   :  { %v393_v48 = vmul.f32 %v1396_v43, %v391_v34  ;;  %vm398_vm1 = vweird.f32 %v1396_v43 }
  0xc9   :  { %vm399_vm3 = vmor %vm397_vm2, %vm398_vm1 }
  0xca   :  { %v394_v8 = vsub.f32 1.0, %v393_v48  ;;  %v404_v48 = vor.u32 1.1754944e-38, %v403_v4 }
  0xcc   :  { %v164_v41 = vpop.f32.mrf.mxu0  ;;  %v395_v33 = vmul.f32 %v1396_v43, %v394_v8 }
  0xcd   :  { %v2126_v44 = vadd.f32 %v164_v41, %v95_v32  ;;  %v401_v32 = vand.u32 2147483647, %v391_v34 }
  0xce   :  { %v396_v58 = vadd.f32 %v1396_v43, %v395_v33 }
  0xcf   :  { %2553 = vst [vmem:[#allocation33_spill] sm:$0xff] %v2126_v44  ;;  %vm402_vm4 = vcmp.eq.f32.partialorder %v401_v32, 8.507059e+37 }
  0xd0   :  { %v400_v41 = vsel %vm399_vm3, %v1396_v43, %v396_v58 }
  0xd3   :  { %v364_v51 = vpop.f32.mrf.mxu3 }
  0xd4   :  { %v407_v63 = vadd.f32 %v364_v51, %v185_v46  ;;  %v384_v39 = vpop.f32.mrf.mxu0  ;;  %v2132_v46 = vperm.slane %v72_v25, 2  ;;  %v405_v51 = vsel %vm402_vm4, %v404_v48, %v400_v41 }
  0xd5   :  { %v430_v17 = vadd.f32 %v2129_v35, %v384_v39 }
  0xd6   :  { %v1366_v6 = vmul.f32 -1.442695, %v407_v63 }
  0xd7   :  { %v431_v63 = vmul.f32 %v430_v17, %v405_v51  ;;  %v2560_v51 = vld [vmem:[#allocation25_spill] sm:$0xff] }
  0xd8   :  { %1397 = vpow2.f32 %v1366_v6  ;;  %v225_v6 = vpop.f32.mrf.mxu2 }
  0xd9   :  { %v226_v8 = vadd.f32 %v225_v6, %v2132_v46  ;;  %v2559_v6 = vld [vmem:[#allocation18_spill] sm:$0xff] }
  0xdb   :  { %v432_v37 = vadd.f32 %v431_v63, %v226_v8  ;;  %v187_v63 = vpop.f32.mrf.mxu1 }
  0xde   :  { %v1398_v55 = vpop.eup %1397 }
  0xdf   :  { %v411_v30 = vadd.f32 1.0, %v1398_v55 }
  0xe0   :  { %v228_v8 = vpop.f32.mrf.mxu2 }
  0xe1   :  { %1399 = vrcp.f32 %v411_v30  ;;  %v423_v53 = vand.u32 2147483648, %v411_v30  ;;  %v421_v2 = vand.u32 2147483647, %v411_v30  ;;  %vm417_vm6 = vweird.f32 %v411_v30 }
  0xe2   :  { %1401 = vtanh.f32 %v432_v37  ;;  %v2557_v37 = vld [vmem:[#allocation24_spill] sm:$0xff] }
  0xe3   :  { %v424_v25 = vor.u32 1.1754944e-38, %v423_v53  ;;  %vm422_vm8 = vcmp.eq.f32.partialorder %v421_v2, 8.507059e+37  ;;  %v2555_v53 = vld [vmem:[#allocation20_spill] sm:$0xff]  ;;  %v2556_v2 = vld [vmem:[#allocation17_spill] sm:$0xff] }
  0xe7   :  { %v1400_v33 = vpop.eup %1399 }
  0xe8   :  { %v413_v44 = vmul.f32 %v1400_v33, %v411_v30  ;;  %vm418_vm5 = vweird.f32 %v1400_v33  ;;  %v1402_v32 = vpop.eup %1401  ;;  %v2554_v30 = vld [vmem:[#allocation23_spill] sm:$0xff] }
  0xe9   :  { %vm419_vm7 = vmor %vm417_vm6, %vm418_vm5 }
  0xea   :  { %v414_v55 = vsub.f32 1.0, %v413_v44  ;;  %v2558_v44 = vld [vmem:[#allocation21_spill] sm:$0xff] }
  0xec   :  { %v415_v34 = vmul.f32 %v1400_v33, %v414_v55  ;;  %v2190_v55 = vpop.f32.mrf.mxu2 }
  0xed   :  { %2562 = vst [vmem:[#allocation35_spill] sm:$0xff] %v2190_v55 }
  0xee   :  { %v416_v39 = vadd.f32 %v1400_v33, %v415_v34 }
  0xf0   :  { %v420_v4 = vsel %vm419_vm7, %v1400_v33, %v416_v39  ;;  %v2188_v33 = vpop.f32.mrf.mxu1 }
  0xf1   :  { %v425_v43 = vsel %vm422_vm8, %v424_v25, %v420_v4  ;;  %2561 = vst [vmem:[#allocation34_spill] sm:$0xff] %v2188_v33 }
  0xf2   :  { %v434_v58 = vsub.f32 1.0, %v425_v43  ;;  %v436_v17 = vmul.f32 0.0, %v425_v43 }
  0xf4   :  { %v435_v41 = vmul.f32 %v1402_v32, %v434_v58  ;;  %v2194_v39 = vpop.f32.mrf.mxu2 }
  0xf5   :  { %2564 = vst [vmem:[#allocation37_spill] sm:$0xff] %v2194_v39 }
  0xf6   :  { %v2135_v48 = vadd.f32 %v436_v17, %v435_v41 }
  0xf8   :  { %460 = vmatmul.f32.vlgmr.msrb.gmra.mxu1 %v2135_v48  ;;  %480 = vmatmul.f32.vlgmr.msrb.gmra.mxu2 %v2135_v48  ;;  %v2192_v34 = vpop.f32.mrf.mxu1 }
  0xf9   :  { %500 = vmatmul.f32.vlgmr.msra.gmra.mxu3 %v2135_v48  ;;  %712 = vmatpush.msrb.mxu1 %v1743_v10  ;;  %2563 = vst [vmem:[#allocation36_spill] sm:$0xff] %v2192_v34  ;;  %v2573_v34 = vld [vmem:[#allocation26_spill] sm:$0xff] }
  0xfa   :  { %786 = vmatpush.msrb.mxu2 %v1716_v1  ;;  %806 = vmatpush.msra.mxu3 %v1839_v38 }
  0xfb   :  { %713 = vmatpush.msrb.mxu1 %v1750_v12 }
  0xfc   :  { %787 = vmatpush.msrb.mxu2 %v1722_v3  ;;  %807 = vmatpush.msra.mxu3 %v1851_v42  ;;  %v2198_v4 = vpop.f32.mrf.mxu2 }
  0xfd   :  { %714 = vmatpush.msrb.mxu1 %v1756_v14  ;;  %2566 = vst [vmem:[#allocation39_spill] sm:$0xff] %v2198_v4 }
  0xfe   :  { %788 = vmatpush.msrb.mxu2 %v1727_v5  ;;  %808 = vmatpush.msra.mxu3 %v1865_v47 }
  0xff   :  { %715 = vmatpush.msrb.mxu1 %v1762_v16 }
 0x100   :  { %789 = vmatpush.msrb.mxu2 %v1733_v7  ;;  %809 = vmatpush.msra.mxu3 %v1874_v50  ;;  %v2196_v25 = vpop.f32.mrf.mxu1 }
 0x101   :  { %716 = vmatpush.msrb.mxu1 %v1773_v19  ;;  %2565 = vst [vmem:[#allocation38_spill] sm:$0xff] %v2196_v25 }
 0x102   :  { %790 = vmatpush.msrb.mxu2 %v1741_v9  ;;  %810 = vmatpush.msra.mxu3 %v1885_v52 }
 0x103   :  { %717 = vmatpush.msrb.mxu1 %v1781_v21 }
 0x104   :  { %791 = vmatpush.msrb.mxu2 %v1748_v11  ;;  %811 = vmatpush.msra.mxu3 %v1895_v54  ;;  %v2202_v58 = vpop.f32.mrf.mxu2 }
 0x105   :  { %718 = vmatpush.msrb.mxu1 %v1787_v23  ;;  %2568 = vst [vmem:[#allocation41_spill] sm:$0xff] %v2202_v58 }
 0x106   :  { %792 = vmatpush.msrb.mxu2 %v1754_v13  ;;  %812 = vmatpush.msra.mxu3 %v1902_v56 }
 0x107   :  { %719 = vmatpush.msrb.mxu1 %v1800_v26 }
 0x108   :  { %793 = vmatpush.msrb.mxu2 %v1759_v15  ;;  %813 = vmatpush.msra.mxu3 %v1908_v57  ;;  %v2200_v43 = vpop.f32.mrf.mxu1 }
 0x109   :  { %720 = vmatpush.msrb.mxu1 %v1811_v29  ;;  %2567 = vst [vmem:[#allocation40_spill] sm:$0xff] %v2200_v43 }
 0x10a   :  { %794 = vmatpush.msrb.mxu2 %v1771_v18  ;;  %814 = vmatpush.msra.mxu3 %v1920_v59 }
 0x10b   :  { %721 = vmatpush.msrb.mxu1 %v1817_v31 }
 0x10c   :  { %795 = vmatpush.msrb.mxu2 %v1779_v20  ;;  %815 = vmatpush.msra.mxu3 %v1929_v60  ;;  %v2206_v41 = vpop.f32.mrf.mxu2 }
 0x10d   :  { %722 = vmatpush.msrb.mxu1 %v1834_v36  ;;  %2570 = vst [vmem:[#allocation43_spill] sm:$0xff] %v2206_v41 }
 0x10e   :  { %796 = vmatpush.msrb.mxu2 %v1785_v22  ;;  %816 = vmatpush.msra.mxu3 %v1934_v61 }
 0x10f   :  { %723 = vmatpush.msrb.mxu1 %v1846_v40 }
 0x110   :  { %797 = vmatpush.msrb.mxu2 %v1791_v24  ;;  %817 = vmatpush.msra.mxu3 %v1940_v62  ;;  %v2204_v32 = vpop.f32.mrf.mxu1 }
 0x111   :  { %724 = vmatpush.msrb.mxu1 %v1860_v45  ;;  %2569 = vst [vmem:[#allocation42_spill] sm:$0xff] %v2204_v32 }
 0x112   :  { %798 = vmatpush.msrb.mxu2 %v1802_v27  ;;  %818 = vmatpush.msra.mxu3 %v1952_v0 }
 0x113   :  { %725 = vmatpush.msrb.mxu1 %v1872_v49 }
 0x114   :  { %799 = vmatpush.msrb.mxu2 %v1808_v28  ;;  %819 = vmatpush.msra.mxu3 %v2554_v30  ;;  %v2210_v33 = vpop.f32.mrf.mxu2 }
 0x115   :  { %726 = vmatpush.msrb.mxu1 %v2555_v53  ;;  %2572 = vst [vmem:[#allocation45_spill] sm:$0xff] %v2210_v33 }
 0x116   :  { %800 = vmatpush.msrb.mxu2 %v2556_v2  ;;  %820 = vmatpush.msra.mxu3 %v2557_v37 }
 0x117   :  { %727 = vmatpush.msrb.mxu1 %v2558_v44 }
 0x118   :  { %801 = vmatpush.msrb.mxu2 %v2559_v6  ;;  %821 = vmatpush.msra.mxu3 %v2560_v51  ;;  %v2208_v17 = vpop.f32.mrf.mxu1  ;;  %v2574_v6 = vld [vmem:[#allocation32_spill] sm:$0xff] }
 0x119   :  { %2571 = vst [vmem:[#allocation44_spill] sm:$0xff] %v2208_v17  ;;  %v188_v25 = vadd.f32 %v187_v63, %v2574_v6 }
 0x175   :  { %v461_v55 = vpop.f32.mrf.mxu1 }
 0x176   :  { %v504_v51 = vadd.f32 %v461_v55, %v2573_v34 }
 0x178   :  { %v1367_v39 = vmul.f32 -1.442695, %v504_v51 }
 0x17a   :  { %1403 = vpow2.f32 %v1367_v39 }
 0x17b   :  { %v481_v4 = vpop.f32.mrf.mxu2 }
 0x17c   :  { %v524_v44 = vadd.f32 %v481_v4, %v188_v25  ;;  %v501_v63 = vpop.f32.mrf.mxu3 }
 0x17d   :  { %v544_v4 = vadd.f32 %v2129_v35, %v501_v63 }
 0x17e   :  { %v1368_v43 = vmul.f32 -1.442695, %v524_v44 }
 0x180   :  { %v1404_v37 = vpop.eup %1403  ;;  %1405 = vpow2.f32 %v1368_v43  ;;  %v229_v43 = vadd.f32 %v228_v8, %v2132_v46 }
 0x181   :  { %v508_v58 = vadd.f32 1.0, %v1404_v37 }
 0x183   :  { %1407 = vrcp.f32 %v508_v58  ;;  %v520_v53 = vand.u32 2147483648, %v508_v58  ;;  %v518_v51 = vand.u32 2147483647, %v508_v58  ;;  %vm514_vm10 = vweird.f32 %v508_v58 }
 0x185   :  { %v521_v44 = vor.u32 1.1754944e-38, %v520_v53  ;;  %vm519_vm12 = vcmp.eq.f32.partialorder %v518_v51, 8.507059e+37 }
 0x186   :  { %v1406_v32 = vpop.eup %1405 }
 0x187   :  { %v528_v41 = vadd.f32 1.0, %v1406_v32 }
 0x189   :  { %v1408_v2 = vpop.eup %1407  ;;  %1409 = vrcp.f32 %v528_v41  ;;  %v538_v28 = vand.u32 2147483647, %v528_v41  ;;  %vm534_vm14 = vweird.f32 %v528_v41 }
 0x18a   :  { %v510_v17 = vmul.f32 %v1408_v2, %v508_v58  ;;  %vm515_vm9 = vweird.f32 %v1408_v2 }
 0x18b   :  { %vm516_vm11 = vmor %vm514_vm10, %vm515_vm9  ;;  %vm539_vm0 = vcmp.eq.f32.partialorder %v538_v28, 8.507059e+37 }
 0x18c   :  { %v511_v33 = vsub.f32 1.0, %v510_v17 }
 0x18e   :  { %v512_v30 = vmul.f32 %v1408_v2, %v511_v33  ;;  %v540_v33 = vand.u32 2147483648, %v528_v41 }
 0x18f   :  { %v1410_v55 = vpop.eup %1409 }
 0x190   :  { %v530_v34 = vmul.f32 %v1410_v55, %v528_v41  ;;  %v513_v39 = vadd.f32 %v1408_v2, %v512_v30  ;;  %vm535_vm13 = vweird.f32 %v1410_v55  ;;  %v541_v53 = vor.u32 1.1754944e-38, %v540_v33 }
 0x191   :  { %vm536_vm15 = vmor %vm534_vm14, %vm535_vm13 }
 0x192   :  { %v531_v25 = vsub.f32 1.0, %v530_v34  ;;  %v517_v37 = vsel %vm516_vm11, %v1408_v2, %v513_v39 }
 0x193   :  { %v522_v32 = vsel %vm519_vm12, %v521_v44, %v517_v37 }
 0x194   :  { %v532_v17 = vmul.f32 %v1410_v55, %v531_v25  ;;  %v545_v6 = vmul.f32 %v544_v4, %v522_v32  ;;  %v2588_v32 = vld [vmem:[#allocation35_spill] sm:$0xff] }
 0x196   :  { %v546_v49 = vadd.f32 %v545_v6, %v229_v43  ;;  %v533_v0 = vadd.f32 %v1410_v55, %v532_v17  ;;  %v232_v17 = vadd.f32 %v2588_v32, %v2132_v46 }
 0x198   :  { %1411 = vtanh.f32 %v546_v49  ;;  %v537_v30 = vsel %vm536_vm15, %v1410_v55, %v533_v0 }
 0x199   :  { %v542_v2 = vsel %vm539_vm0, %v541_v53, %v537_v30 }
 0x19a   :  { %v548_v58 = vsub.f32 1.0, %v542_v2  ;;  %v550_v8 = vmul.f32 %v542_v2, %v2135_v48 }
 0x19e   :  { %v1412_v51 = vpop.eup %1411 }
 0x19f   :  { %v549_v63 = vmul.f32 %v1412_v51, %v548_v58 }
 0x1a1   :  { %v2217_v34 = vadd.f32 %v550_v8, %v549_v63 }
 0x1a3   :  { %574 = vmatmul.f32.vlgmr.msra.gmra.mxu0 %v2217_v34  ;;  %594 = vmatmul.f32.vlgmr.msra.gmra.mxu1 %v2217_v34 }
 0x1a4   :  { %614 = vmatmul.f32.vlgmr.msra.gmra.mxu2 %v2217_v34  ;;  %826 = vmatpush.msra.mxu0 %v1743_v10  ;;  %v2580_v10 = vld [vmem:[#allocation17_spill] sm:$0xff] }
 0x1a5   :  { %900 = vmatpush.msra.mxu1 %v1716_v1  ;;  %920 = vmatpush.msra.mxu2 %v1839_v38  ;;  %v2575_v1 = vld [vmem:[#allocation22_spill] sm:$0xff] }
 0x1a6   :  { %827 = vmatpush.msra.mxu0 %v1750_v12  ;;  %v2582_v12 = vld [vmem:[#allocation21_spill] sm:$0xff] }
 0x1a7   :  { %901 = vmatpush.msra.mxu1 %v1722_v3  ;;  %921 = vmatpush.msra.mxu2 %v1851_v42  ;;  %v2576_v3 = vld [vmem:[#allocation19_spill] sm:$0xff] }
 0x1a8   :  { %828 = vmatpush.msra.mxu0 %v1756_v14  ;;  %v2584_v14 = vld [vmem:[#allocation25_spill] sm:$0xff] }
 0x1a9   :  { %902 = vmatpush.msra.mxu1 %v1727_v5  ;;  %922 = vmatpush.msra.mxu2 %v1865_v47  ;;  %v2577_v5 = vld [vmem:[#allocation16_spill] sm:$0xff] }
 0x1aa   :  { %829 = vmatpush.msra.mxu0 %v1762_v16  ;;  %v2586_v16 = vld [vmem:[#allocation34_spill] sm:$0xff] }
 0x1ab   :  { %903 = vmatpush.msra.mxu1 %v1733_v7  ;;  %923 = vmatpush.msra.mxu2 %v1874_v50  ;;  %v2578_v7 = vld [vmem:[#allocation23_spill] sm:$0xff] }
 0x1ac   :  { %830 = vmatpush.msra.mxu0 %v1773_v19 }
 0x1ad   :  { %904 = vmatpush.msra.mxu1 %v1741_v9  ;;  %924 = vmatpush.msra.mxu2 %v1885_v52  ;;  %v2579_v9 = vld [vmem:[#allocation20_spill] sm:$0xff] }
 0x1ae   :  { %831 = vmatpush.msra.mxu0 %v1781_v21  ;;  %v2587_v21 = vld [vmem:[#allocation27_spill] sm:$0xff] }
 0x1af   :  { %905 = vmatpush.msra.mxu1 %v1748_v11  ;;  %925 = vmatpush.msra.mxu2 %v1895_v54  ;;  %v2581_v11 = vld [vmem:[#allocation24_spill] sm:$0xff] }
 0x1b0   :  { %832 = vmatpush.msra.mxu0 %v1787_v23 }
 0x1b1   :  { %906 = vmatpush.msra.mxu1 %v1754_v13  ;;  %926 = vmatpush.msra.mxu2 %v1902_v56  ;;  %v2583_v13 = vld [vmem:[#allocation18_spill] sm:$0xff] }
 0x1b2   :  { %833 = vmatpush.msra.mxu0 %v1800_v26 }
 0x1b3   :  { %907 = vmatpush.msra.mxu1 %v1759_v15  ;;  %927 = vmatpush.msra.mxu2 %v1908_v57  ;;  %v2585_v15 = vld [vmem:[#allocation32_spill] sm:$0xff] }
 0x1b4   :  { %834 = vmatpush.msra.mxu0 %v1811_v29 }
 0x1b5   :  { %908 = vmatpush.msra.mxu1 %v1771_v18  ;;  %928 = vmatpush.msra.mxu2 %v1920_v59  ;;  %v191_v18 = vadd.f32 %v2586_v16, %v2585_v15  ;;  %v2288_v16 = vld [vmem:[#allocation3 + $0x170] sm:$0xff] }
 0x1b6   :  { %835 = vmatpush.msra.mxu0 %v1817_v31 }
 0x1b7   :  { %909 = vmatpush.msra.mxu1 %v1779_v20  ;;  %929 = vmatpush.msra.mxu2 %v1929_v60 }
 0x1b8   :  { %836 = vmatpush.msra.mxu0 %v1834_v36 }
 0x1b9   :  { %910 = vmatpush.msra.mxu1 %v1785_v22  ;;  %930 = vmatpush.msra.mxu2 %v1934_v61 }
 0x1ba   :  { %837 = vmatpush.msra.mxu0 %v1846_v40 }
 0x1bb   :  { %911 = vmatpush.msra.mxu1 %v1791_v24  ;;  %931 = vmatpush.msra.mxu2 %v1940_v62 }
 0x1bc   :  { %838 = vmatpush.msra.mxu0 %v1860_v45 }
 0x1bd   :  { %912 = vmatpush.msra.mxu1 %v1802_v27  ;;  %932 = vmatpush.msra.mxu2 %v2575_v1 }
 0x1be   :  { %839 = vmatpush.msra.mxu0 %v2576_v3 }
 0x1bf   :  { %913 = vmatpush.msra.mxu1 %v2577_v5  ;;  %933 = vmatpush.msra.mxu2 %v2578_v7 }
 0x1c0   :  { %840 = vmatpush.msra.mxu0 %v2579_v9 }
 0x1c1   :  { %914 = vmatpush.msra.mxu1 %v2580_v10  ;;  %934 = vmatpush.msra.mxu2 %v2581_v11 }
 0x1c2   :  { %841 = vmatpush.msra.mxu0 %v2582_v12  ;;  %v2282_v12 = vld [vmem:[#allocation3 + $0x178] sm:$0xff] }
 0x1c3   :  { %915 = vmatpush.msra.mxu1 %v2583_v13  ;;  %935 = vmatpush.msra.mxu2 %v2584_v14  ;;  %v2285_v13 = vld [vmem:[#allocation3 + $0x168] sm:$0xff] }
 0x220   :  { %v575_v19 = vpop.f32.mrf.mxu0  ;;  %v595_v20 = vpop.f32.mrf.mxu1 }
 0x221   :  { %v618_v22 = vadd.f32 %v575_v19, %v2587_v21  ;;  %v638_v23 = vadd.f32 %v595_v20, %v191_v18  ;;  %v2294_v18 = vld [vmem:[#allocation3 + $0x150] sm:$0xff]  ;;  %v2297_v19 = vld [vmem:[#allocation3 + $0x158] sm:$0xff]  ;;  %v2300_v20 = vld [vmem:[#allocation3 + $0x148] sm:$0xff] }
 0x222   :  { %v2303_v21 = vld [vmem:[#allocation3 + $0x138] sm:$0xff] }
 0x223   :  { %v1369_v24 = vmul.f32 -1.442695, %v618_v22  ;;  %v1370_v26 = vmul.f32 -1.442695, %v638_v23  ;;  %v2307_v22 = vld [vmem:[#allocation3 + $0x130] sm:$0xff]  ;;  %v2310_v23 = vld [vmem:[#allocation3 + $0x120] sm:$0xff] }
 0x225   :  { %1413 = vpow2.f32 %v1369_v24  ;;  %v2314_v24 = vld [vmem:[#allocation3 + $0x118] sm:$0xff] }
 0x226   :  { %1415 = vpow2.f32 %v1370_v26  ;;  %v2317_v26 = vld [vmem:[#allocation3 + $0x108] sm:$0xff] }
 0x227   :  { %v615_v55 = vpop.f32.mrf.mxu2 }
 0x228   :  { %v658_v37 = vadd.f32 %v2129_v35, %v615_v55 }
 0x22b   :  { %v1414_v27 = vpop.eup %1413 }
 0x22c   :  { %v1416_v28 = vpop.eup %1415  ;;  %v622_v29 = vadd.f32 1.0, %v1414_v27  ;;  %v2324_v27 = vld [vmem:[#allocation3 + $0xf0] sm:$0xff] }
 0x22d   :  { %v642_v31 = vadd.f32 1.0, %v1416_v28  ;;  %v2331_v28 = vld [vmem:[#allocation3 + $0xd8] sm:$0xff] }
 0x22e   :  { %1417 = vrcp.f32 %v622_v29  ;;  %v634_v0 = vand.u32 2147483648, %v622_v29  ;;  %v632_v6 = vand.u32 2147483647, %v622_v29  ;;  %vm628_vm2 = vweird.f32 %v622_v29 }
 0x22f   :  { %1419 = vrcp.f32 %v642_v31  ;;  %v654_v30 = vand.u32 2147483648, %v642_v31  ;;  %vm648_vm6 = vweird.f32 %v642_v31  ;;  %v652_v53 = vand.u32 2147483647, %v642_v31 }
 0x230   :  { %v635_v44 = vor.u32 1.1754944e-38, %v634_v0  ;;  %vm633_vm4 = vcmp.eq.f32.partialorder %v632_v6, 8.507059e+37  ;;  %v2394_v0 = vld [vmem:[#allocation3] sm:$0xff] }
 0x231   :  { %v655_v51 = vor.u32 1.1754944e-38, %v654_v30  ;;  %vm653_vm8 = vcmp.eq.f32.partialorder %v652_v53, 8.507059e+37 }
 0x234   :  { %v1418_v36 = vpop.eup %1417 }
 0x235   :  { %v1420_v38 = vpop.eup %1419  ;;  %v624_v40 = vmul.f32 %v1418_v36, %v622_v29  ;;  %vm629_vm1 = vweird.f32 %v1418_v36  ;;  %v2338_v29 = vld [vmem:[#allocation3 + $0xc0] sm:$0xff] }
 0x236   :  { %v644_v42 = vmul.f32 %v1420_v38, %v642_v31  ;;  %vm630_vm3 = vmor %vm628_vm2, %vm629_vm1  ;;  %vm649_vm5 = vweird.f32 %v1420_v38  ;;  %v2345_v31 = vld [vmem:[#allocation3 + $0xa8] sm:$0xff] }
 0x237   :  { %v625_v45 = vsub.f32 1.0, %v624_v40  ;;  %vm650_vm7 = vmor %vm648_vm6, %vm649_vm5  ;;  %v2366_v40 = vld [vmem:[#allocation3 + $0x60] sm:$0xff] }
 0x238   :  { %v645_v49 = vsub.f32 1.0, %v644_v42  ;;  %v2373_v42 = vld [vmem:[#allocation3 + $0x48] sm:$0xff] }
 0x239   :  { %v626_v48 = vmul.f32 %v1418_v36, %v625_v45  ;;  %v2380_v45 = vld [vmem:[#allocation3 + $0x30] sm:$0xff] }
 0x23a   :  { %v646_v41 = vmul.f32 %v1420_v38, %v645_v49  ;;  %v2387_v49 = vld [vmem:[#allocation3 + $0x18] sm:$0xff] }
 0x23b   :  { %v627_v39 = vadd.f32 %v1418_v36, %v626_v48 }
 0x23c   :  { %v647_v43 = vadd.f32 %v1420_v38, %v646_v41 }
 0x23d   :  { %v631_v25 = vsel %vm630_vm3, %v1418_v36, %v627_v39  ;;  %v2352_v36 = vld [vmem:[#allocation3 + $0x90] sm:$0xff] }
 0x23e   :  { %v636_v4 = vsel %vm633_vm4, %v635_v44, %v631_v25  ;;  %v651_v58 = vsel %vm650_vm7, %v1420_v38, %v647_v43  ;;  %v2359_v38 = vld [vmem:[#allocation3 + $0x78] sm:$0xff] }
 0x23f   :  { %v659_v33 = vmul.f32 %v658_v37, %v636_v4  ;;  %v656_v63 = vsel %vm653_vm8, %v655_v51, %v651_v58  ;;  %v2590_v44 = vld [vmem:[#allocation28_spill] sm:$0xff] }
 0x240   :  { %v662_v8 = vsub.f32 1.0, %v656_v63  ;;  %v664_v9 = vmul.f32 %v656_v63, %v2217_v34  ;;  %v2291_v34 = vld [vmem:[#allocation3 + $0x160] sm:$0xff] }
 0x241   :  { %v660_v2 = vadd.f32 %v659_v33, %v232_v17 }
 0x243   :  { %1421 = vtanh.f32 %v660_v2 }
 0x249   :  { %v1422_v3 = vpop.eup %1421 }
 0x24a   :  { %v663_v5 = vmul.f32 %v1422_v3, %v662_v8 }
 0x24c   :  { %v2277_v10 = vadd.f32 %v664_v9, %v663_v5 }
 0x24e   :  { %688 = vmatmul.f32.vlgmr.msrb.gmra.mxu3 %v2277_v10  ;;  %708 = vmatmul.f32.vlgmr.msrb.gmra.mxu0 %v2277_v10 }
 0x24f   :  { %728 = vmatmul.f32.vlgmr.msrb.gmra.mxu1 %v2277_v10  ;;  %940 = vmatpush.msrb.mxu3 %v2282_v12 }
 0x250   :  { %1014 = vmatpush.msrb.mxu0 %v2285_v13  ;;  %1034 = vmatpush.msrb.mxu1 %v2288_v16 }
 0x251   :  { %941 = vmatpush.msrb.mxu3 %v2291_v34 }
 0x252   :  { %1015 = vmatpush.msrb.mxu0 %v2294_v18  ;;  %1035 = vmatpush.msrb.mxu1 %v2297_v19 }
 0x253   :  { %942 = vmatpush.msrb.mxu3 %v2300_v20 }
 0x254   :  { %1016 = vmatpush.msrb.mxu0 %v2303_v21  ;;  %1036 = vmatpush.msrb.mxu1 %v1865_v47  ;;  %v2321_v47 = vld [vmem:[#allocation3 + $0x100] sm:$0xff] }
 0x255   :  { %943 = vmatpush.msrb.mxu3 %v2307_v22 }
 0x256   :  { %1017 = vmatpush.msrb.mxu0 %v2310_v23  ;;  %1037 = vmatpush.msrb.mxu1 %v1874_v50  ;;  %v2328_v50 = vld [vmem:[#allocation3 + $0xe8] sm:$0xff] }
 0x257   :  { %944 = vmatpush.msrb.mxu3 %v2314_v24 }
 0x258   :  { %1018 = vmatpush.msrb.mxu0 %v2317_v26  ;;  %1038 = vmatpush.msrb.mxu1 %v1885_v52  ;;  %v2335_v52 = vld [vmem:[#allocation3 + $0xd0] sm:$0xff] }
 0x259   :  { %945 = vmatpush.msrb.mxu3 %v2321_v47 }
 0x25a   :  { %1019 = vmatpush.msrb.mxu0 %v2324_v27  ;;  %1039 = vmatpush.msrb.mxu1 %v1895_v54  ;;  %v2342_v54 = vld [vmem:[#allocation3 + $0xb8] sm:$0xff] }
 0x25b   :  { %946 = vmatpush.msrb.mxu3 %v2328_v50 }
 0x25c   :  { %1020 = vmatpush.msrb.mxu0 %v2331_v28  ;;  %1040 = vmatpush.msrb.mxu1 %v1902_v56  ;;  %v2349_v56 = vld [vmem:[#allocation3 + $0xa0] sm:$0xff] }
 0x25d   :  { %947 = vmatpush.msrb.mxu3 %v2335_v52 }
 0x25e   :  { %1021 = vmatpush.msrb.mxu0 %v2338_v29  ;;  %1041 = vmatpush.msrb.mxu1 %v1908_v57  ;;  %v2356_v57 = vld [vmem:[#allocation3 + $0x88] sm:$0xff] }
 0x25f   :  { %948 = vmatpush.msrb.mxu3 %v2342_v54 }
 0x260   :  { %1022 = vmatpush.msrb.mxu0 %v2345_v31  ;;  %1042 = vmatpush.msrb.mxu1 %v1920_v59  ;;  %v2363_v59 = vld [vmem:[#allocation3 + $0x70] sm:$0xff] }
 0x261   :  { %949 = vmatpush.msrb.mxu3 %v2349_v56 }
 0x262   :  { %1023 = vmatpush.msrb.mxu0 %v2352_v36  ;;  %1043 = vmatpush.msrb.mxu1 %v1929_v60  ;;  %v2370_v60 = vld [vmem:[#allocation3 + $0x58] sm:$0xff] }
 0x263   :  { %950 = vmatpush.msrb.mxu3 %v2356_v57 }
 0x264   :  { %1024 = vmatpush.msrb.mxu0 %v2359_v38  ;;  %1044 = vmatpush.msrb.mxu1 %v1934_v61  ;;  %v2377_v61 = vld [vmem:[#allocation3 + $0x40] sm:$0xff] }
 0x265   :  { %951 = vmatpush.msrb.mxu3 %v2363_v59 }
 0x266   :  { %1025 = vmatpush.msrb.mxu0 %v2366_v40  ;;  %1045 = vmatpush.msrb.mxu1 %v1940_v62  ;;  %v2384_v62 = vld [vmem:[#allocation3 + $0x28] sm:$0xff] }
 0x267   :  { %952 = vmatpush.msrb.mxu3 %v2370_v60 }
 0x268   :  { %1026 = vmatpush.msrb.mxu0 %v2373_v42  ;;  %1046 = vmatpush.msrb.mxu1 %v2575_v1  ;;  %v2391_v1 = vld [vmem:[#allocation3 + $0x10] sm:$0xff] }
 0x269   :  { %953 = vmatpush.msrb.mxu3 %v2377_v61 }
 0x26a   :  { %1027 = vmatpush.msrb.mxu0 %v2380_v45  ;;  %1047 = vmatpush.msrb.mxu1 %v2578_v7  ;;  %v2589_v7 = vld [vmem:[#allocation36_spill] sm:$0xff] }
 0x26b   :  { %954 = vmatpush.msrb.mxu3 %v2384_v62  ;;  %v194_v48 = vadd.f32 %v2589_v7, %v2585_v15 }
 0x26c   :  { %1028 = vmatpush.msrb.mxu0 %v2387_v49  ;;  %1048 = vmatpush.msrb.mxu1 %v2581_v11 }
 0x26d   :  { %955 = vmatpush.msrb.mxu3 %v2391_v1 }
 0x26e   :  { %1029 = vmatpush.msrb.mxu0 %v2394_v0  ;;  %1049 = vmatpush.msrb.mxu1 %v2584_v14 }
 0x2cb   :  { %v709_v6 = vpop.f32.mrf.mxu0 }
 0x2cc   :  { %v752_v41 = vadd.f32 %v709_v6, %v194_v48  ;;  %v729_v3 = vpop.f32.mrf.mxu1 }
 0x2cd   :  { %v772_v7 = vadd.f32 %v2129_v35, %v729_v3 }
 0x2ce   :  { %v1372_v55 = vmul.f32 -1.442695, %v752_v41 }
 0x2d0   :  { %1423 = vpow2.f32 %v1372_v55  ;;  %v2591_v55 = vld [vmem:[#allocation37_spill] sm:$0xff] }
 0x2d1   :  { %v689_v39 = vpop.f32.mrf.mxu3 }
 0x2d2   :  { %v732_v11 = vadd.f32 %v689_v39, %v2590_v44  ;;  %v235_v39 = vadd.f32 %v2591_v55, %v2132_v46 }
 0x2d4   :  { %v1371_v25 = vmul.f32 -1.442695, %v732_v11 }
 0x2d6   :  { %v1424_v37 = vpop.eup %1423  ;;  %1425 = vpow2.f32 %v1371_v25 }
 0x2d7   :  { %v756_v4 = vadd.f32 1.0, %v1424_v37 }
 0x2d9   :  { %1427 = vrcp.f32 %v756_v4  ;;  %v768_v44 = vand.u32 2147483648, %v756_v4  ;;  %vm762_vm14 = vweird.f32 %v756_v4  ;;  %v766_v25 = vand.u32 2147483647, %v756_v4 }
 0x2db   :  { %vm767_vm0 = vcmp.eq.f32.partialorder %v766_v25, 8.507059e+37 }
 0x2dc   :  { %v1426_v43 = vpop.eup %1425 }
 0x2dd   :  { %v736_v32 = vadd.f32 1.0, %v1426_v43 }
 0x2df   :  { %1429 = vrcp.f32 %v736_v32  ;;  %v1428_v17 = vpop.eup %1427  ;;  %v748_v58 = vand.u32 2147483648, %v736_v32  ;;  %v746_v63 = vand.u32 2147483647, %v736_v32  ;;  %vm742_vm10 = vweird.f32 %v736_v32 }
 0x2e0   :  { %v758_v14 = vmul.f32 %v1428_v17, %v756_v4  ;;  %vm763_vm13 = vweird.f32 %v1428_v17  ;;  %v1512_v4 = vld [vmem:[#allocation3 + $0x128] sm:$0xff] }
 0x2e1   :  { %v749_v9 = vor.u32 1.1754944e-38, %v748_v58  ;;  %vm747_vm12 = vcmp.eq.f32.partialorder %v746_v63, 8.507059e+37  ;;  %vm764_vm15 = vmor %vm762_vm14, %vm763_vm13 }
 0x2e2   :  { %v759_v53 = vsub.f32 1.0, %v758_v14 }
 0x2e4   :  { %v760_v8 = vmul.f32 %v1428_v17, %v759_v53 }
 0x2e5   :  { %v1430_v33 = vpop.eup %1429 }
 0x2e6   :  { %v738_v30 = vmul.f32 %v1430_v33, %v736_v32  ;;  %vm743_vm9 = vweird.f32 %v1430_v33  ;;  %v761_v41 = vadd.f32 %v1428_v17, %v760_v8  ;;  %v769_v32 = vor.u32 1.1754944e-38, %v768_v44 }
 0x2e7   :  { %vm744_vm11 = vmor %vm742_vm10, %vm743_vm9 }
 0x2e8   :  { %v739_v2 = vsub.f32 1.0, %v738_v30  ;;  %v765_v43 = vsel %vm764_vm15, %v1428_v17, %v761_v41 }
 0x2e9   :  { %v770_v14 = vsel %vm767_vm0, %v769_v32, %v765_v43 }
 0x2ea   :  { %v740_v51 = vmul.f32 %v1430_v33, %v739_v2  ;;  %v776_v30 = vsub.f32 1.0, %v770_v14  ;;  %v778_v2 = vmul.f32 %v770_v14, %v2277_v10  ;;  %v1511_v10 = vld [vmem:[#allocation3 + $0x140] sm:$0xff] }
 0x2ec   :  { %v741_v5 = vadd.f32 %v1430_v33, %v740_v51 }
 0x2ee   :  { %v745_v48 = vsel %vm744_vm11, %v1430_v33, %v741_v5 }
 0x2ef   :  { %v750_v6 = vsel %vm747_vm12, %v749_v9, %v745_v48 }
 0x2f0   :  { %v773_v11 = vmul.f32 %v772_v7, %v750_v6 }
 0x2f2   :  { %v774_v37 = vadd.f32 %v773_v11, %v235_v39 }
 0x2f4   :  { %1431 = vtanh.f32 %v774_v37 }
 0x2fa   :  { %v1432_v33 = vpop.eup %1431 }
 0x2fb   :  { %v777_v53 = vmul.f32 %v1432_v33, %v776_v30 }
 0x2fd   :  { %v2405_v58 = vadd.f32 %v778_v2, %v777_v53 }
 0x2ff   :  { %802 = vmatmul.f32.vlgmr.msrb.gmra.mxu2 %v2405_v58  ;;  %822 = vmatmul.f32.vlgmr.msra.gmra.mxu3 %v2405_v58 }
 0x300   :  { %842 = vmatmul.f32.vlgmr.msra.gmra.mxu0 %v2405_v58  ;;  %1054 = vmatpush.msrb.mxu2 %v2282_v12 }
 0x301   :  { %1128 = vmatpush.msra.mxu3 %v2285_v13  ;;  %1148 = vmatpush.msra.mxu0 %v2288_v16  ;;  %v1513_v13 = vld [vmem:[#allocation3 + $0x110] sm:$0xff]  ;;  %v1514_v16 = vld [vmem:[#allocation3 + $0xf8] sm:$0xff] }
 0x302   :  { %1055 = vmatpush.msrb.mxu2 %v2291_v34 }
 0x303   :  { %1129 = vmatpush.msra.mxu3 %v2294_v18  ;;  %1149 = vmatpush.msra.mxu0 %v2297_v19  ;;  %v1515_v18 = vld [vmem:[#allocation3 + $0xe0] sm:$0xff]  ;;  %v1516_v19 = vld [vmem:[#allocation3 + $0xc8] sm:$0xff] }
 0x304   :  { %1056 = vmatpush.msrb.mxu2 %v2300_v20 }
 0x305   :  { %1130 = vmatpush.msra.mxu3 %v2303_v21  ;;  %1150 = vmatpush.msra.mxu0 %v1511_v10  ;;  %v1517_v21 = vld [vmem:[#allocation3 + $0xb0] sm:$0xff] }
 0x306   :  { %1057 = vmatpush.msrb.mxu2 %v2307_v22  ;;  %v2594_v10 = vld [vmem:[#allocation39_spill] sm:$0xff] }
 0x307   :  { %1131 = vmatpush.msra.mxu3 %v2310_v23  ;;  %1151 = vmatpush.msra.mxu0 %v1512_v4  ;;  %v1518_v23 = vld [vmem:[#allocation3 + $0x98] sm:$0xff]  ;;  %v238_v4 = vadd.f32 %v2594_v10, %v2132_v46 }
 0x308   :  { %1058 = vmatpush.msrb.mxu2 %v2314_v24 }
 0x309   :  { %1132 = vmatpush.msra.mxu3 %v2317_v26  ;;  %1152 = vmatpush.msra.mxu0 %v1513_v13  ;;  %v1519_v26 = vld [vmem:[#allocation3 + $0x80] sm:$0xff] }
 0x30a   :  { %1059 = vmatpush.msrb.mxu2 %v2321_v47 }
 0x30b   :  { %1133 = vmatpush.msra.mxu3 %v2324_v27  ;;  %1153 = vmatpush.msra.mxu0 %v1514_v16  ;;  %v1520_v27 = vld [vmem:[#allocation3 + $0x68] sm:$0xff] }
 0x30c   :  { %1060 = vmatpush.msrb.mxu2 %v2328_v50 }
 0x30d   :  { %1134 = vmatpush.msra.mxu3 %v2331_v28  ;;  %1154 = vmatpush.msra.mxu0 %v1515_v18  ;;  %v1521_v28 = vld [vmem:[#allocation3 + $0x50] sm:$0xff] }
 0x30e   :  { %1061 = vmatpush.msrb.mxu2 %v2335_v52 }
 0x30f   :  { %1135 = vmatpush.msra.mxu3 %v2338_v29  ;;  %1155 = vmatpush.msra.mxu0 %v1516_v19  ;;  %v1522_v29 = vld [vmem:[#allocation3 + $0x38] sm:$0xff] }
 0x310   :  { %1062 = vmatpush.msrb.mxu2 %v2342_v54 }
 0x311   :  { %1136 = vmatpush.msra.mxu3 %v2345_v31  ;;  %1156 = vmatpush.msra.mxu0 %v1517_v21  ;;  %v1523_v31 = vld [vmem:[#allocation3 + $0x20] sm:$0xff] }
 0x312   :  { %1063 = vmatpush.msrb.mxu2 %v2349_v56 }
 0x313   :  { %1137 = vmatpush.msra.mxu3 %v2352_v36  ;;  %1157 = vmatpush.msra.mxu0 %v1518_v23  ;;  %v1524_v36 = vld [vmem:[#allocation3 + $0x8] sm:$0xff] }
 0x314   :  { %1064 = vmatpush.msrb.mxu2 %v2356_v57 }
 0x315   :  { %1138 = vmatpush.msra.mxu3 %v2359_v38  ;;  %1158 = vmatpush.msra.mxu0 %v1519_v26  ;;  %v2592_v38 = vld [vmem:[#allocation38_spill] sm:$0xff] }
 0x316   :  { %1065 = vmatpush.msrb.mxu2 %v2363_v59 }
 0x317   :  { %1139 = vmatpush.msra.mxu3 %v2366_v40  ;;  %1159 = vmatpush.msra.mxu0 %v1520_v27  ;;  %v197_v40 = vadd.f32 %v2592_v38, %v2585_v15 }
 0x318   :  { %1066 = vmatpush.msrb.mxu2 %v2370_v60 }
 0x319   :  { %1140 = vmatpush.msra.mxu3 %v2373_v42  ;;  %1160 = vmatpush.msra.mxu0 %v1521_v28 }
 0x31a   :  { %1067 = vmatpush.msrb.mxu2 %v2377_v61 }
 0x31b   :  { %1141 = vmatpush.msra.mxu3 %v2380_v45  ;;  %1161 = vmatpush.msra.mxu0 %v1522_v29  ;;  %v2593_v45 = vld [vmem:[#allocation29_spill] sm:$0xff] }
 0x31c   :  { %1068 = vmatpush.msrb.mxu2 %v2384_v62 }
 0x31d   :  { %1142 = vmatpush.msra.mxu3 %v2387_v49  ;;  %1162 = vmatpush.msra.mxu0 %v1523_v31 }
 0x31e   :  { %1069 = vmatpush.msrb.mxu2 %v2391_v1 }
 0x31f   :  { %1143 = vmatpush.msra.mxu3 %v2394_v0  ;;  %1163 = vmatpush.msra.mxu0 %v1524_v36 }
 0x37d   :  { %v843_v37 = vpop.f32.mrf.mxu0 }
 0x37e   :  { %v886_v30 = vadd.f32 %v2129_v35, %v843_v37 }
 0x382   :  { %v803_v42 = vpop.f32.mrf.mxu2  ;;  %v823_v17 = vpop.f32.mrf.mxu3 }
 0x383   :  { %v846_v51 = vadd.f32 %v803_v42, %v2593_v45  ;;  %v866_v63 = vadd.f32 %v823_v17, %v197_v40 }
 0x385   :  { %v1373_v8 = vmul.f32 -1.442695, %v846_v51  ;;  %v1374_v3 = vmul.f32 -1.442695, %v866_v63 }
 0x387   :  { %1433 = vpow2.f32 %v1373_v8 }
 0x388   :  { %1435 = vpow2.f32 %v1374_v3  ;;  %v2475_v3 = vld [vmem:[#allocation6 + $0x3] ss:$0 sm:$0xff] }
 0x38d   :  { %v1434_v49 = vpop.eup %1433 }
 0x38e   :  { %v1436_v5 = vpop.eup %1435  ;;  %v850_v9 = vadd.f32 1.0, %v1434_v49 }
 0x38f   :  { %v870_v7 = vadd.f32 1.0, %v1436_v5  ;;  %v2597_v5 = vld [vmem:[#allocation41_spill] sm:$0xff] }
 0x390   :  { %1437 = vrcp.f32 %v850_v9  ;;  %v862_v39 = vand.u32 2147483648, %v850_v9  ;;  %v860_v25 = vand.u32 2147483647, %v850_v9  ;;  %vm856_vm2 = vweird.f32 %v850_v9 }
 0x391   :  { %1439 = vrcp.f32 %v870_v7  ;;  %v882_v13 = vand.u32 2147483648, %v870_v7  ;;  %vm876_vm6 = vweird.f32 %v870_v7  ;;  %v880_v18 = vand.u32 2147483647, %v870_v7 }
 0x392   :  { %v863_v14 = vor.u32 1.1754944e-38, %v862_v39  ;;  %vm861_vm4 = vcmp.eq.f32.partialorder %v860_v25, 8.507059e+37 }
 0x393   :  { %v883_v23 = vor.u32 1.1754944e-38, %v882_v13  ;;  %vm881_vm8 = vcmp.eq.f32.partialorder %v880_v18, 8.507059e+37 }
 0x396   :  { %v1438_v0 = vpop.eup %1437 }
 0x397   :  { %v1440_v48 = vpop.eup %1439  ;;  %v852_v6 = vmul.f32 %v1438_v0, %v850_v9  ;;  %vm857_vm1 = vweird.f32 %v1438_v0  ;;  %v241_v9 = vadd.f32 %v2597_v5, %v2132_v46  ;;  %v1252_v5 = vld [vmem:[#allocation8 + $0x78] sm:$0xff] }
 0x398   :  { %v872_v41 = vmul.f32 %v1440_v48, %v870_v7  ;;  %vm858_vm3 = vmor %vm856_vm2, %vm857_vm1  ;;  %vm877_vm5 = vweird.f32 %v1440_v48 }
 0x399   :  { %v853_v55 = vsub.f32 1.0, %v852_v6  ;;  %vm878_vm7 = vmor %vm876_vm6, %vm877_vm5 }
 0x39a   :  { %v873_v44 = vsub.f32 1.0, %v872_v41 }
 0x39b   :  { %v854_v11 = vmul.f32 %v1438_v0, %v853_v55 }
 0x39c   :  { %v874_v43 = vmul.f32 %v1440_v48, %v873_v44 }
 0x39d   :  { %v855_v32 = vadd.f32 %v1438_v0, %v854_v11 }
 0x39e   :  { %v875_v2 = vadd.f32 %v1440_v48, %v874_v43 }
 0x39f   :  { %v859_v33 = vsel %vm858_vm3, %v1438_v0, %v855_v32 }
 0x3a0   :  { %v864_v53 = vsel %vm861_vm4, %v863_v14, %v859_v33  ;;  %v879_v21 = vsel %vm878_vm7, %v1440_v48, %v875_v2  ;;  %v2598_v33 = vld [vmem:[#allocation42_spill] sm:$0xff] }
 0x3a1   :  { %v887_v16 = vmul.f32 %v886_v30, %v864_v53  ;;  %v884_v26 = vsel %vm881_vm8, %v883_v23, %v879_v21  ;;  %v203_v53 = vadd.f32 %v2598_v33, %v2585_v15 }
 0x3a2   :  { %v890_v35 = vsub.f32 1.0, %v884_v26  ;;  %v892_v29 = vmul.f32 %v884_v26, %v2405_v58 }
 0x3a3   :  { %v888_v19 = vadd.f32 %v887_v16, %v238_v4  ;;  %v2599_v4 = vld [vmem:[#allocation31_spill] sm:$0xff] }
 0x3a5   :  { %1441 = vtanh.f32 %v888_v19 }
 0x3ab   :  { %v1442_v27 = vpop.eup %1441 }
 0x3ac   :  { %v891_v28 = vmul.f32 %v1442_v27, %v890_v35 }
 0x3ae   :  { %v2451_v31 = vadd.f32 %v892_v29, %v891_v28 }
 0x3b0   :  { %916 = vmatmul.f32.vlgmr.msra.gmra.mxu1 %v2451_v31  ;;  %936 = vmatmul.f32.vlgmr.msra.gmra.mxu2 %v2451_v31 }
 0x3b1   :  { %956 = vmatmul.f32.vlgmr.msrb.gmra.mxu3 %v2451_v31  ;;  %1168 = vmatpush.msra.mxu1 %v2282_v12 }
 0x3b2   :  { %1257 = vmatpush.msra.mxu2 %v1252_v5 }
 0x3b3   :  { %1169 = vmatpush.msra.mxu1 %v2291_v34  ;;  %v2595_v34 = vld [vmem:[#allocation30_spill] sm:$0xff] }
 0x3b5   :  { %1170 = vmatpush.msra.mxu1 %v2300_v20 }
 0x3b7   :  { %1171 = vmatpush.msra.mxu1 %v2307_v22 }
 0x3b9   :  { %1172 = vmatpush.msra.mxu1 %v2314_v24  ;;  %v2596_v24 = vld [vmem:[#allocation40_spill] sm:$0xff] }
 0x3bb   :  { %1173 = vmatpush.msra.mxu1 %v2321_v47  ;;  %v200_v47 = vadd.f32 %v2596_v24, %v2585_v15 }
 0x3bd   :  { %1174 = vmatpush.msra.mxu1 %v2328_v50 }
 0x3bf   :  { %1175 = vmatpush.msra.mxu1 %v2335_v52 }
 0x3c1   :  { %1176 = vmatpush.msra.mxu1 %v2342_v54 }
 0x3c3   :  { %1177 = vmatpush.msra.mxu1 %v2349_v56 }
 0x3c5   :  { %1178 = vmatpush.msra.mxu1 %v2356_v57 }
 0x3c7   :  { %1179 = vmatpush.msra.mxu1 %v2363_v59 }
 0x3c9   :  { %1180 = vmatpush.msra.mxu1 %v2370_v60 }
 0x3cb   :  { %1181 = vmatpush.msra.mxu1 %v2377_v61 }
 0x3cd   :  { %1182 = vmatpush.msra.mxu1 %v2384_v62 }
 0x3cf   :  { %1183 = vmatpush.msra.mxu1 %v2391_v1 }
 0x42d   :  { %v917_v12 = vpop.f32.mrf.mxu1 }
 0x42e   :  { %v960_v20 = vadd.f32 %v917_v12, %v2595_v34 }
 0x430   :  { %v1375_v22 = vmul.f32 -1.442695, %v960_v20 }
 0x432   :  { %1443 = vpow2.f32 %v1375_v22 }
 0x433   :  { %v937_v50 = vpop.f32.mrf.mxu2 }
 0x434   :  { %v980_v52 = vadd.f32 %v937_v50, %v200_v47  ;;  %v957_v42 = vpop.f32.mrf.mxu3 }
 0x435   :  { %v1000_v49 = vadd.f32 %v2475_v3, %v957_v42 }
 0x436   :  { %v1376_v54 = vmul.f32 -1.442695, %v980_v52 }
 0x438   :  { %v1444_v56 = vpop.eup %1443  ;;  %1445 = vpow2.f32 %v1376_v54 }
 0x439   :  { %v964_v57 = vadd.f32 1.0, %v1444_v56 }
 0x43b   :  { %1447 = vrcp.f32 %v964_v57  ;;  %v976_v58 = vand.u32 2147483648, %v964_v57  ;;  %v974_v38 = vand.u32 2147483647, %v964_v57  ;;  %vm970_vm10 = vweird.f32 %v964_v57 }
 0x43d   :  { %v977_v51 = vor.u32 1.1754944e-38, %v976_v58  ;;  %vm975_vm12 = vcmp.eq.f32.partialorder %v974_v38, 8.507059e+37 }
 0x43e   :  { %v1446_v59 = vpop.eup %1445 }
 0x43f   :  { %v984_v60 = vadd.f32 1.0, %v1446_v59 }
 0x441   :  { %v1448_v61 = vpop.eup %1447  ;;  %1449 = vrcp.f32 %v984_v60  ;;  %v996_v6 = vand.u32 2147483648, %v984_v60  ;;  %v994_v41 = vand.u32 2147483647, %v984_v60  ;;  %vm990_vm14 = vweird.f32 %v984_v60 }
 0x442   :  { %v966_v62 = vmul.f32 %v1448_v61, %v964_v57  ;;  %vm971_vm9 = vweird.f32 %v1448_v61 }
 0x443   :  { %vm972_vm11 = vmor %vm970_vm10, %vm971_vm9  ;;  %v997_v11 = vor.u32 1.1754944e-38, %v996_v6  ;;  %vm995_vm0 = vcmp.eq.f32.partialorder %v994_v41, 8.507059e+37  ;;  %v2601_v6 = vld [vmem:[#allocation44_spill] sm:$0xff] }
 0x444   :  { %v967_v1 = vsub.f32 1.0, %v966_v62  ;;  %v206_v41 = vadd.f32 %v2601_v6, %v2585_v15  ;;  %v1241_v15 = vld [vmem:[#allocation8 + $0x20] sm:$0xff] }
 0x446   :  { %v968_v36 = vmul.f32 %v1448_v61, %v967_v1 }
 0x447   :  { %v1450_v40 = vpop.eup %1449 }
 0x448   :  { %v986_v17 = vmul.f32 %v1450_v40, %v984_v60  ;;  %v969_v45 = vadd.f32 %v1448_v61, %v968_v36  ;;  %vm991_vm13 = vweird.f32 %v1450_v40 }
 0x449   :  { %vm992_vm15 = vmor %vm990_vm14, %vm991_vm13 }
 0x44a   :  { %v987_v63 = vsub.f32 1.0, %v986_v17  ;;  %v973_v8 = vsel %vm972_vm11, %v1448_v61, %v969_v45  ;;  %v2600_v61 = vld [vmem:[#allocation43_spill] sm:$0xff] }
 0x44b   :  { %v978_v7 = vsel %vm975_vm12, %v977_v51, %v973_v8  ;;  %v244_v62 = vadd.f32 %v2600_v61, %v2132_v46 }
 0x44c   :  { %v988_v0 = vmul.f32 %v1450_v40, %v987_v63  ;;  %v1001_v48 = vmul.f32 %v1000_v49, %v978_v7  ;;  %v1250_v7 = vld [vmem:[#allocation8 + $0x68] sm:$0xff] }
 0x44e   :  { %v1002_v55 = vadd.f32 %v1001_v48, %v241_v9  ;;  %v989_v39 = vadd.f32 %v1450_v40, %v988_v0  ;;  %v1251_v9 = vld [vmem:[#allocation8 + $0x70] sm:$0xff]  ;;  %v1249_v0 = vld [vmem:[#allocation8 + $0x60] sm:$0xff]  ;;  %v1248_v48 = vld [vmem:[#allocation8 + $0x58] sm:$0xff] }
 0x44f   :  { %1258 = vmatpush.msra.mxu2 %v1251_v9 }
 0x450   :  { %1451 = vtanh.f32 %v1002_v55  ;;  %v993_v44 = vsel %vm992_vm15, %v1450_v40, %v989_v39  ;;  %v1247_v55 = vld [vmem:[#allocation8 + $0x50] sm:$0xff] }
 0x451   :  { %v998_v25 = vsel %vm995_vm0, %v997_v11, %v993_v44  ;;  %1259 = vmatpush.msra.mxu2 %v1250_v7  ;;  %v1246_v11 = vld [vmem:[#allocation8 + $0x48] sm:$0xff] }
 0x452   :  { %v1004_v37 = vsub.f32 1.0, %v998_v25  ;;  %v1006_v14 = vmul.f32 %v998_v25, %v2451_v31 }
 0x453   :  { %1260 = vmatpush.msra.mxu2 %v1249_v0 }
 0x455   :  { %1261 = vmatpush.msra.mxu2 %v1248_v48 }
 0x456   :  { %v1452_v43 = vpop.eup %1451 }
 0x457   :  { %v1005_v32 = vmul.f32 %v1452_v43, %v1004_v37  ;;  %1262 = vmatpush.msra.mxu2 %v1247_v55  ;;  %v1245_v37 = vld [vmem:[#allocation8 + $0x40] sm:$0xff]  ;;  %v1244_v43 = vld [vmem:[#allocation8 + $0x38] sm:$0xff] }
 0x459   :  { %v1007_v30 = vadd.f32 %v1006_v14, %v1005_v32  ;;  %1263 = vmatpush.msra.mxu2 %v1246_v11  ;;  %v1243_v32 = vld [vmem:[#allocation8 + $0x30] sm:$0xff] }
 0x45b   :  { %1030 = vmatmul.f32.vlgmr.msrb.gmra.mxu0 %v1007_v30  ;;  %1050 = vmatmul.f32.vlgmr.msrb.gmra.mxu1 %v1007_v30 }
 0x45c   :  { %1070 = vmatmul.f32.vlgmr.msrb.gmra.mxu2 %v1007_v30 }
 0x45d   :  { %1264 = vmatpush.msra.mxu2 %v1245_v37 }
 0x45f   :  { %1265 = vmatpush.msra.mxu2 %v1244_v43 }
 0x461   :  { %1266 = vmatpush.msra.mxu2 %v1243_v32 }
 0x4d8   :  { %v1031_v2 = vpop.f32.mrf.mxu0  ;;  %v1051_v10 = vpop.f32.mrf.mxu1 }
 0x4d9   :  { %v1074_v13 = vadd.f32 %v1031_v2, %v2599_v4  ;;  %v1094_v16 = vadd.f32 %v1051_v10, %v203_v53  ;;  %v1242_v53 = vld [vmem:[#allocation8 + $0x28] sm:$0xff]  ;;  %v1240_v4 = vld [vmem:[#allocation8 + $0x18] sm:$0xff] }
 0x4da   :  { %1267 = vmatpush.msra.mxu2 %v1242_v53 }
 0x4db   :  { %v1377_v18 = vmul.f32 -1.442695, %v1074_v13  ;;  %v1378_v19 = vmul.f32 -1.442695, %v1094_v16  ;;  %v1239_v16 = vld [vmem:[#allocation8 + $0x10] sm:$0xff] }
 0x4dc   :  { %1268 = vmatpush.msra.mxu2 %v1241_v15 }
 0x4dd   :  { %1453 = vpow2.f32 %v1377_v18  ;;  %v1238_v18 = vld [vmem:[#allocation8 + $0x8] sm:$0xff] }
 0x4de   :  { %1455 = vpow2.f32 %v1378_v19  ;;  %1269 = vmatpush.msra.mxu2 %v1240_v4 }
 0x4df   :  { %v1071_v50 = vpop.f32.mrf.mxu2 }
 0x4e0   :  { %v1114_v57 = vadd.f32 %v2475_v3, %v1071_v50  ;;  %1270 = vmatpush.msra.mxu2 %v1239_v16 }
 0x4e2   :  { %1271 = vmatpush.msra.mxu2 %v1238_v18 }
 0x4e3   :  { %v1454_v21 = vpop.eup %1453 }
 0x4e4   :  { %v1456_v23 = vpop.eup %1455  ;;  %v1078_v26 = vadd.f32 1.0, %v1454_v21  ;;  %v1237_v21 = vld [vmem:[#allocation8] sm:$0xff] }
 0x4e5   :  { %v1098_v35 = vadd.f32 1.0, %v1456_v23  ;;  %1272 = vmatpush.msra.mxu2 %v1237_v21 }
 0x4e6   :  { %1457 = vrcp.f32 %v1078_v26  ;;  %v1090_v20 = vand.u32 2147483648, %v1078_v26  ;;  %v1088_v24 = vand.u32 2147483647, %v1078_v26  ;;  %vm1084_vm2 = vweird.f32 %v1078_v26 }
 0x4e7   :  { %1459 = vrcp.f32 %v1098_v35  ;;  %v1110_v58 = vand.u32 2147483648, %v1098_v35  ;;  %vm1104_vm6 = vweird.f32 %v1098_v35  ;;  %v1108_v36 = vand.u32 2147483647, %v1098_v35 }
 0x4e8   :  { %v1091_v54 = vor.u32 1.1754944e-38, %v1090_v20  ;;  %vm1089_vm4 = vcmp.eq.f32.partialorder %v1088_v24, 8.507059e+37 }
 0x4e9   :  { %v1111_v42 = vor.u32 1.1754944e-38, %v1110_v58  ;;  %vm1109_vm8 = vcmp.eq.f32.partialorder %v1108_v36, 8.507059e+37 }
 0x4ec   :  { %v1458_v27 = vpop.eup %1457 }
 0x4ed   :  { %v1460_v28 = vpop.eup %1459  ;;  %v1080_v29 = vmul.f32 %v1458_v27, %v1078_v26  ;;  %vm1085_vm1 = vweird.f32 %v1458_v27 }
 0x4ee   :  { %v1100_v31 = vmul.f32 %v1460_v28, %v1098_v35  ;;  %vm1086_vm3 = vmor %vm1084_vm2, %vm1085_vm1  ;;  %vm1105_vm5 = vweird.f32 %v1460_v28 }
 0x4ef   :  { %v1081_v12 = vsub.f32 1.0, %v1080_v29  ;;  %vm1106_vm7 = vmor %vm1104_vm6, %vm1105_vm5 }
 0x4f0   :  { %v1101_v34 = vsub.f32 1.0, %v1100_v31 }
 0x4f1   :  { %v1082_v22 = vmul.f32 %v1458_v27, %v1081_v12 }
 0x4f2   :  { %v1102_v47 = vmul.f32 %v1460_v28, %v1101_v34 }
 0x4f3   :  { %v1083_v52 = vadd.f32 %v1458_v27, %v1082_v22 }
 0x4f4   :  { %v1103_v60 = vadd.f32 %v1460_v28, %v1102_v47 }
 0x4f5   :  { %v1087_v56 = vsel %vm1086_vm3, %v1458_v27, %v1083_v52 }
 0x4f6   :  { %v1092_v59 = vsel %vm1089_vm4, %v1091_v54, %v1087_v56  ;;  %v1107_v40 = vsel %vm1106_vm7, %v1460_v28, %v1103_v60 }
 0x4f7   :  { %v1115_v1 = vmul.f32 %v1114_v57, %v1092_v59  ;;  %v1112_v17 = vsel %vm1109_vm8, %v1111_v42, %v1107_v40  ;;  %v2603_v59 = vld [vmem:[#allocation45_spill] sm:$0xff] }
 0x4f8   :  { %v1118_v45 = vsub.f32 1.0, %v1112_v17  ;;  %v1120_v8 = vmul.f32 %v1112_v17, %v1007_v30  ;;  %v2602_v30 = vld [vmem:[#allocation33_spill] sm:$0xff]  ;;  %v247_v60 = vadd.f32 %v2603_v59, %v2132_v46 }
 0x4f9   :  { %v1116_v38 = vadd.f32 %v1115_v1, %v244_v62  ;;  %v1392_v46 = vld [vmem:[%s2513_s5] ss:$0 sm:$0xff]  ;;  %s1663_s5 = smov [#allocation10]  }
 0x4fa   :  { %s1316_s6 = sshll.u32 %s1663_s5, 4  ;;  %s1317_s6 = int_to_ptr.vmem [resolvable:$true] %s1316_s6 }
 0x4fb   :  { %1461 = vtanh.f32 %v1116_v38 }
 0x501   :  { %v1462_v51 = vpop.eup %1461 }
 0x502   :  { %v1119_v63 = vmul.f32 %v1462_v51, %v1118_v45 }
 0x504   :  { %v2487_v49 = vadd.f32 %v1120_v8, %v1119_v63 }
 0x506   :  { %1144 = vmatmul.f32.vlgmr.msra.gmra.mxu3 %v2487_v49  ;;  %1164 = vmatmul.f32.vlgmr.msra.gmra.mxu0 %v2487_v49 }
 0x507   :  { %1184 = vmatmul.f32.vlgmr.msra.gmra.mxu1 %v2487_v49 }
 0x583   :  { %v1165_v39 = vpop.f32.mrf.mxu0 }
 0x584   :  { %v1208_v44 = vadd.f32 %v1165_v39, %v206_v41  ;;  %v1185_v24 = vpop.f32.mrf.mxu1 }
 0x585   :  { %v1228_v52 = vadd.f32 %v2475_v3, %v1185_v24 }
 0x586   :  { %v1380_v25 = vmul.f32 -1.442695, %v1208_v44 }
 0x588   :  { %1463 = vpow2.f32 %v1380_v25 }
 0x589   :  { %v1145_v14 = vpop.f32.mrf.mxu3 }
 0x58a   :  { %v1188_v33 = vadd.f32 %v1145_v14, %v2602_v30 }
 0x58c   :  { %v1379_v2 = vmul.f32 -1.442695, %v1188_v33 }
 0x58e   :  { %v1464_v10 = vpop.eup %1463  ;;  %1465 = vpow2.f32 %v1379_v2 }
 0x58f   :  { %v1212_v13 = vadd.f32 1.0, %v1464_v10 }
 0x591   :  { %1467 = vrcp.f32 %v1212_v13  ;;  %v1224_v61 = vand.u32 2147483648, %v1212_v13  ;;  %vm1218_vm14 = vweird.f32 %v1212_v13  ;;  %v1222_v1 = vand.u32 2147483647, %v1212_v13 }
 0x593   :  { %v1225_v38 = vor.u32 1.1754944e-38, %v1224_v61  ;;  %vm1223_vm0 = vcmp.eq.f32.partialorder %v1222_v1, 8.507059e+37 }
 0x594   :  { %v1466_v19 = vpop.eup %1465 }
 0x595   :  { %v1192_v23 = vadd.f32 1.0, %v1466_v19 }
 0x597   :  { %1469 = vrcp.f32 %v1192_v23  ;;  %v1468_v26 = vpop.eup %1467  ;;  %v1204_v12 = vand.u32 2147483648, %v1192_v23  ;;  %v1202_v20 = vand.u32 2147483647, %v1192_v23  ;;  %vm1198_vm10 = vweird.f32 %v1192_v23 }
 0x598   :  { %v1214_v35 = vmul.f32 %v1468_v26, %v1212_v13  ;;  %vm1219_vm13 = vweird.f32 %v1468_v26 }
 0x599   :  { %v1205_v50 = vor.u32 1.1754944e-38, %v1204_v12  ;;  %vm1203_vm12 = vcmp.eq.f32.partialorder %v1202_v20, 8.507059e+37  ;;  %vm1220_vm15 = vmor %vm1218_vm14, %vm1219_vm13 }
 0x59a   :  { %v1215_v29 = vsub.f32 1.0, %v1214_v35 }
 0x59c   :  { %v1216_v22 = vmul.f32 %v1468_v26, %v1215_v29 }
 0x59d   :  { %v1470_v27 = vpop.eup %1469 }
 0x59e   :  { %v1194_v28 = vmul.f32 %v1470_v27, %v1192_v23  ;;  %vm1199_vm9 = vweird.f32 %v1470_v27  ;;  %v1217_v57 = vadd.f32 %v1468_v26, %v1216_v22 }
 0x59f   :  { %vm1200_vm11 = vmor %vm1198_vm10, %vm1199_vm9 }
 0x5a0   :  { %v1195_v31 = vsub.f32 1.0, %v1194_v28  ;;  %v1221_v36 = vsel %vm1220_vm15, %v1468_v26, %v1217_v57 }
 0x5a1   :  { %v1226_v40 = vsel %vm1223_vm0, %v1225_v38, %v1221_v36 }
 0x5a2   :  { %v1196_v34 = vmul.f32 %v1470_v27, %v1195_v31  ;;  %v1232_v3 = vsub.f32 1.0, %v1226_v40  ;;  %v1234_v45 = vmul.f32 %v1226_v40, %v2487_v49 }
 0x5a4   :  { %v1197_v47 = vadd.f32 %v1470_v27, %v1196_v34 }
 0x5a6   :  { %v1201_v54 = vsel %vm1200_vm11, %v1470_v27, %v1197_v47 }
 0x5a7   :  { %v1206_v56 = vsel %vm1203_vm12, %v1205_v50, %v1201_v54 }
 0x5a8   :  { %v1229_v62 = vmul.f32 %v1228_v52, %v1206_v56 }
 0x5aa   :  { %v1230_v58 = vadd.f32 %v1229_v62, %v247_v60 }
 0x5ac   :  { %1471 = vtanh.f32 %v1230_v58 }
 0x5b2   :  { %v1472_v42 = vpop.eup %1471 }
 0x5b3   :  { %v1233_v17 = vmul.f32 %v1472_v42, %v1232_v3 }
 0x5b5   :  { %v1235_v51 = vadd.f32 %v1234_v45, %v1233_v17 }
 0x5b7   :  { %1273 = vmatmul.f32.vlgmr.msra.gmra.mxu2 %v1235_v51  ;;  %1236 = vst [vmem:[#allocation9] sm:$0xff] %v1235_v51 }
 0x5b8   :  { %1310 = dma.vmem_to_hbm [thread:$0]  %s1306_s12, 128, %s1308_s10, [#allocation5]  }
 0x63a   :  { %v1274_v63 = vpop.f32.mrf.mxu2 }
 0x63b   :  { %v1275_v8 = vadd.f32 %v1392_v46, %v1274_v63 }
 0x63d   :  { %1277 = vmax.xlane.f32.xlu0 %v1275_v8 }
 0x6b0   :  { %v1278_v5 = vpop.xlane.xlu0 %1277 }
 0x6b1   :  { %v1279_v9 = vsub.f32 %v1275_v8, %v1278_v5 }
 0x6b3   :  { %v1280_v7 = vmul.f32 1.442695, %v1279_v9 }
 0x6b5   :  { %1473 = vpow2.f32 %v1280_v7 }
 0x6bb   :  { %v1474_v0 = vpop.eup %1473 }
 0x6bc   :  { %1282 = vadd.xlane.f32.xlu0 %v1474_v0 }
 0x72f   :  { %v1283_v49 = vpop.xlane.xlu0 %1282 }
 0x730   :  { %1475 = vrcp.f32 %v1283_v49  ;;  %v1295_v55 = vand.u32 2147483648, %v1283_v49  ;;  %v1293_v44 = vand.u32 2147483647, %v1283_v49  ;;  %vm1289_vm2 = vweird.f32 %v1283_v49 }
 0x732   :  { %v1296_v25 = vor.u32 1.1754944e-38, %v1295_v55  ;;  %vm1294_vm4 = vcmp.eq.f32.partialorder %v1293_v44, 8.507059e+37 }
 0x736   :  { %v1476_v48 = vpop.eup %1475 }
 0x737   :  { %v1285_v6 = vmul.f32 %v1476_v48, %v1283_v49  ;;  %vm1290_vm1 = vweird.f32 %v1476_v48 }
 0x738   :  { %vm1291_vm3 = vmor %vm1289_vm2, %vm1290_vm1 }
 0x739   :  { %v1286_v41 = vsub.f32 1.0, %v1285_v6 }
 0x73b   :  { %v1287_v39 = vmul.f32 %v1476_v48, %v1286_v41 }
 0x73d   :  { %v1288_v11 = vadd.f32 %v1476_v48, %v1287_v39 }
 0x73f   :  { %v1292_v37 = vsel %vm1291_vm3, %v1476_v48, %v1288_v11 }
 0x740   :  { %v1297_v43 = vsel %vm1294_vm4, %v1296_v25, %v1292_v37 }
 0x741   :  { %v1298_v32 = vmul.f32 %v1474_v0, %v1297_v43 }
 0x743   :  { %1299 = vst [vmem:[#allocation10] sm:$0xff] %v1298_v32 }
 0x744   :  { %1321 = dma.vmem_to_hbm [thread:$0]  %s1317_s6, 128, %s1319_s3, [#allocation11]  }
 0x745   :  { %1650 = dma.done.wait [#allocation5], 128  }
 0x746   :  { %1651 = vsyncadd [#allocation5], 4294967168 }
 0x747   :  { %1652 = dma.done.wait [#allocation11], 128  }
 0x748   :  { %1653 = vsyncadd [#allocation11], 4294967168 }
 0x749   :  { %1330 = vsyncpa [#allocation4], 1 }
 0x74a   :  { %1331 = vsyncpa [#allocation7], 1 }
 0x74b   :  { %1332 = vsyncpa [#allocation5], 1 }
 0x74c   :  { %1333 = vsyncpa [#allocation11], 1 }

</bundles_post_ra>
